<compile_context>
chip_gen: v5e
topology: v5e:2x2
jax: 0.10.0
libtpu: 0.0.40
codegen_flags: <defaults>
</compile_context>

<pallas_src>
import functools

import jax
import jax.numpy as jnp
from jax.experimental import pallas as pl
from jax.experimental.pallas import tpu as pltpu


def _round_up(x, m):
    return ((x + m - 1) // m) * m


# ---------------------------------------------------------------------------
# Fused decoder kernel: concat + 4x (Conv2d 3x3, padding=1, ReLU)
# ---------------------------------------------------------------------------
def _fused_decoder_kernel(width, pad0, halo, cu, cr, cout,
                          up_ref, res_ref,
                          w0_ref, b0_ref, w1_ref, b1_ref,
                          w2_ref, b2_ref, w3_ref, b3_ref,
                          o_ref, xp_ref):
    """One grid step = one image of the batch.

    xp_ref is a single zero-halo'd padded flat buffer (C, halo|H*W|halo),
    reused by all 4 conv layers.  Each conv = 9 tap matmuls directly from
    lane-shifted xp slices (no im2col buffer), accumulated in f32.
    """
    hw = up_ref.shape[1]                 # H2 * W2 (lane-dense)
    cin0 = cu + cr

    # Zero only the halo lanes actually read by the +/-1-row taps.  Done every
    # grid step (2 aligned (C, halo) stores, trivial) so it stays correct when
    # the batch axis is megacore-parallel (scratch is per-core).
    zhalo = jnp.zeros((cin0, halo), xp_ref.dtype)
    xp_ref[:, pad0 - halo:pad0] = zhalo
    xp_ref[:, pad0 + hw:pad0 + hw + halo] = zhalo

    # Fused concat: up -> rows [0:cu], res -> rows [cu:cu+cr].  The
    # concatenated tensor never exists in HBM.
    xp_ref[0:cu, pad0:pad0 + hw] = up_ref[...]
    xp_ref[cu:cin0, pad0:pad0 + hw] = res_ref[...]

    # Left/right row-wrap masks, computed once and reused by all layers/taps.
    lane = jax.lax.broadcasted_iota(jnp.int32, (1, hw), 1)
    jmod = lane % width
    mask_l = (jmod > 0).astype(jnp.float32)             # kills dx = -1 wrap
    mask_r = (jmod < width - 1).astype(jnp.float32)     # kills dx = +1 wrap

    def conv3x3_relu(cin, w_ref_, b_ref_):
        # 9 tap matmuls (Cout, Cin) @ (Cin, hw); vertical out-of-image taps
        # read the zero halo, horizontal wrap is masked on the partial product.
        acc = jnp.zeros((cout, hw), jnp.float32)
        for dy in (-1, 0, 1):
            for dx in (-1, 0, 1):
                t = (dy + 1) * 3 + (dx + 1)
                start = pad0 + dy * width + dx           # static lane offset
                slab = xp_ref[0:cin, start:start + hw]
                p = jnp.dot(w_ref_[t], slab,
                            preferred_element_type=jnp.float32)
                if dx == -1:
                    p = p * mask_l
                elif dx == 1:
                    p = p * mask_r
                acc = acc + p
        return jnp.maximum(acc + b_ref_[...], 0.0)

    y = conv3x3_relu(cin0, w0_ref, b0_ref)
    xp_ref[0:cout, pad0:pad0 + hw] = y.astype(xp_ref.dtype)
    y = conv3x3_relu(cout, w1_ref, b1_ref)
    xp_ref[0:cout, pad0:pad0 + hw] = y.astype(xp_ref.dtype)
    y = conv3x3_relu(cout, w2_ref, b2_ref)
    xp_ref[0:cout, pad0:pad0 + hw] = y.astype(xp_ref.dtype)
    y = conv3x3_relu(cout, w3_ref, b3_ref)
    o_ref[...] = y.astype(o_ref.dtype)                   # lane-dense store


# ---------------------------------------------------------------------------
# Forward pass (NCHW in / NCHW out, matching PyTorch)
# ---------------------------------------------------------------------------
def _wtaps(w):
    # (Cout, Cin, 3, 3) -> (9, Cout, Cin), tap index t = kh*3 + kw
    cout, cin = w.shape[0], w.shape[1]
    return jnp.transpose(w, (2, 3, 0, 1)).reshape(9, cout, cin).astype(jnp.bfloat16)


def upsampling_block_forward(params, x_nchw, res_nchw):
    N, Cx, H, W = x_nchw.shape
    Cu = params["up_b"].shape[0]
    Cr = res_nchw.shape[1]
    Cout = params["dec0_b"].shape[0]
    H2, W2 = 2 * H, 2 * W
    hw2 = H2 * W2
    Cin0 = Cu + Cr

    # ConvTranspose2d(k=2, s=2): per-pixel matmul + 2x2 pixel interleave.
    # TODO(synk): the stride-2 pixel interleave is an even/odd lane interleave
    # with no clean Mosaic primitive; it is done here in XLA (linear cost)
    # instead of the old O((H*W)^2) one-hot scatter matmul inside the kernel.
    up = jnp.einsum("ncij,copq->noipjq", x_nchw, params["up_w"],
                    precision=jax.lax.Precision.HIGHEST)
    up = up.reshape(N, Cu, H2, W2) + params["up_b"][None, :, None, None]
    up_flat = up.reshape(N, Cu, hw2).astype(jnp.bfloat16)
    res_flat = res_nchw.reshape(N, Cr, hw2).astype(jnp.bfloat16)

    w_taps = [_wtaps(params[f"dec{i}_w"]) for i in range(4)]
    b_cols = [params[f"dec{i}_b"].reshape(-1, 1).astype(jnp.float32)
              for i in range(4)]

    halo = _round_up(W2 + 1, 128)        # covers the +/-1-row tap reach
    pad0 = halo                          # interior starts lane-aligned
    xp_len = pad0 + hw2 + halo

    # Scoped-VMEM budget from the actual footprint (double-buffered per-step
    # IO + resident weights + xp scratch) with slack, below v7x's 64 MiB.
    per_step_io = (Cu + Cr) * hw2 * 2 + Cout * hw2 * 4
    w_bytes = (sum(int(w.size) * 2 for w in w_taps)
               + sum(int(b.size) * 4 for b in b_cols))
    xp_bytes = Cin0 * xp_len * 2
    vmem_limit = int(min(56 * 2**20,
                         2 * (2 * per_step_io + w_bytes + xp_bytes) + (8 << 20)))

    kernel = functools.partial(_fused_decoder_kernel,
                               W2, pad0, halo, Cu, Cr, Cout)

    out_flat = pl.pallas_call(
        kernel,
        out_shape=jax.ShapeDtypeStruct((N, Cout, hw2), jnp.float32),
        grid=(N,),
        in_specs=[
            pl.BlockSpec((pl.Squeezed(), Cu, hw2), lambda n: (n, 0, 0)),
            pl.BlockSpec((pl.Squeezed(), Cr, hw2), lambda n: (n, 0, 0)),
            pl.BlockSpec((9, Cout, Cin0), lambda n: (0, 0, 0)),
            pl.BlockSpec((Cout, 1), lambda n: (0, 0)),
            pl.BlockSpec((9, Cout, Cout), lambda n: (0, 0, 0)),
            pl.BlockSpec((Cout, 1), lambda n: (0, 0)),
            pl.BlockSpec((9, Cout, Cout), lambda n: (0, 0, 0)),
            pl.BlockSpec((Cout, 1), lambda n: (0, 0)),
            pl.BlockSpec((9, Cout, Cout), lambda n: (0, 0, 0)),
            pl.BlockSpec((Cout, 1), lambda n: (0, 0)),
        ],
        out_specs=pl.BlockSpec((pl.Squeezed(), Cout, hw2), lambda n: (n, 0, 0)),
        scratch_shapes=[pltpu.VMEM((Cin0, xp_len), jnp.bfloat16)],
        compiler_params=pltpu.CompilerParams(
            dimension_semantics=("parallel",),
            vmem_limit_bytes=vmem_limit),
    )(up_flat, res_flat,
      w_taps[0], b_cols[0], w_taps[1], b_cols[1],
      w_taps[2], b_cols[2], w_taps[3], b_cols[3])

    return out_flat.reshape(N, Cout, H2, W2)             # NCHW


# ---------------------------------------------------------------------------
# Pure-JAX reference (for correctness check) and param init
# ---------------------------------------------------------------------------
def reference_forward(params, x_nchw, res_nchw):
    hi = jax.lax.Precision.HIGHEST
    N, Cx, H, W = x_nchw.shape
    Cu = params["up_b"].shape[0]
    x = jnp.transpose(x_nchw, (0, 2, 3, 1))
    res = jnp.transpose(res_nchw, (0, 2, 3, 1))
    w = params["up_w"]                                       # (Cx, Cu, 2, 2)
    wm = jnp.transpose(w, (0, 2, 3, 1)).reshape(Cx, 4 * Cu)  # (c, di, dj, o)
    up = jnp.dot(x.reshape(N * H * W, Cx), wm, precision=hi)
    up = up.reshape(N, H, W, 2, 2, Cu).transpose(0, 1, 3, 2, 4, 5)
    up = up.reshape(N, 2 * H, 2 * W, Cu) + params["up_b"]
    out = jnp.concatenate([up, res], axis=-1)
    for i in range(4):
        wk = jnp.transpose(params[f"dec{i}_w"], (2, 3, 1, 0))  # HWIO
        out = jax.lax.conv_general_dilated(
            out, wk, window_strides=(1, 1), padding="SAME",
            dimension_numbers=("NHWC", "HWIO", "NHWC"), precision=hi)
        out = jnp.maximum(out + params[f"dec{i}_b"], 0.0)
    return jnp.transpose(out, (0, 3, 1, 2))


def init_params(key, in_channels, res_channels, out_channels):
    keys = jax.random.split(key, 10)
    p = {}
    # ConvTranspose2d weight: (in_channels, out_channels, 2, 2)
    p["up_w"] = 0.1 * jax.random.normal(
        keys[0], (in_channels, out_channels, 2, 2), jnp.float32)
    p["up_b"] = 0.1 * jax.random.normal(keys[1], (out_channels,), jnp.float32)
    cin = out_channels + res_channels * 5
    for i in range(4):
        p[f"dec{i}_w"] = 0.1 * jax.random.normal(
            keys[2 + 2 * i], (out_channels, cin, 3, 3), jnp.float32)
        p[f"dec{i}_b"] = 0.1 * jax.random.normal(
            keys[3 + 2 * i], (out_channels,), jnp.float32)
        cin = out_channels
    return p


if __name__ == "__main__":
    in_channels, res_channels, out_channels = 4, 4, 8
    N, H, W = 2, 8, 8                      # upsampled spatial = 16 x 16

    key = jax.random.PRNGKey(0)
    k_params, kx, kres = jax.random.split(key, 3)
    params = init_params(k_params, in_channels, res_channels, out_channels)

    x = jax.random.normal(kx, (N, in_channels, H, W), jnp.float32)
    res = jax.random.normal(kres, (N, res_channels * 5, 2 * H, 2 * W),
                            jnp.float32)

    fwd = jax.jit(functools.partial(upsampling_block_forward, params))
    out = jax.block_until_ready(fwd(x, res))

    assert out.shape == (N, out_channels, 2 * H, 2 * W), out.shape
    assert out.dtype == jnp.float32

    ref = jax.block_until_ready(
        jax.jit(functools.partial(reference_forward, params))(x, res))
    # bf16 activations/weights with f32 accumulation -> a few-percent tolerance.
    assert jnp.allclose(out, ref, rtol=3e-2, atol=3e-2), (
        float(jnp.max(jnp.abs(out - ref))))

    print("KERNEL_OK")
</pallas_src>

<mosaic_0001>
module attributes {stable_mosaic.version = 11 : i64} {
  func.func @_fused_decoder_kernel(%arg0: i32, %arg1: memref<1x8x256xbf16, #tpu.memory_space<vmem>>, %arg2: memref<1x20x256xbf16, #tpu.memory_space<vmem>>, %arg3: memref<9x8x28xbf16, #tpu.memory_space<vmem>>, %arg4: memref<8x1xf32, #tpu.memory_space<vmem>>, %arg5: memref<9x8x8xbf16, #tpu.memory_space<vmem>>, %arg6: memref<8x1xf32, #tpu.memory_space<vmem>>, %arg7: memref<9x8x8xbf16, #tpu.memory_space<vmem>>, %arg8: memref<8x1xf32, #tpu.memory_space<vmem>>, %arg9: memref<9x8x8xbf16, #tpu.memory_space<vmem>>, %arg10: memref<8x1xf32, #tpu.memory_space<vmem>>, %arg11: memref<1x8x256xf32, #tpu.memory_space<vmem>>, %arg12: memref<28x512xbf16, #tpu.memory_space<vmem>>) attributes {dimension_semantics = [#tpu.dimension_semantics<parallel>], iteration_bounds = array<i64: 2>, scalar_prefetch = 0 : i64, scratch_operands = 1 : i64, tpu.core_type = #tpu.core_type<tc>, window_params = [{transform_indices = @transform_0, window_bounds = array<i64: 1, 8, 256>}, {transform_indices = @transform_1, window_bounds = array<i64: 1, 20, 256>}, {pipeline_mode = #tpu.pipeline_mode<synchronous>, transform_indices = @transform_2, window_bounds = array<i64: 9, 8, 28>}, {pipeline_mode = #tpu.pipeline_mode<synchronous>, transform_indices = @transform_3, window_bounds = array<i64: 8, 1>}, {pipeline_mode = #tpu.pipeline_mode<synchronous>, transform_indices = @transform_4, window_bounds = array<i64: 9, 8, 8>}, {pipeline_mode = #tpu.pipeline_mode<synchronous>, transform_indices = @transform_5, window_bounds = array<i64: 8, 1>}, {pipeline_mode = #tpu.pipeline_mode<synchronous>, transform_indices = @transform_6, window_bounds = array<i64: 9, 8, 8>}, {pipeline_mode = #tpu.pipeline_mode<synchronous>, transform_indices = @transform_7, window_bounds = array<i64: 8, 1>}, {pipeline_mode = #tpu.pipeline_mode<synchronous>, transform_indices = @transform_8, window_bounds = array<i64: 9, 8, 8>}, {pipeline_mode = #tpu.pipeline_mode<synchronous>, transform_indices = @transform_9, window_bounds = array<i64: 8, 1>}, {transform_indices = @transform_10, window_bounds = array<i64: 1, 8, 256>}]} {
    %cst = arith.constant 0.000000e+00 : bf16
    %0 = vector.broadcast %cst : bf16 to vector<28x128xbf16>
    %c0 = arith.constant 0 : index
    %c0_0 = arith.constant 0 : index
    %1 = vector.load %arg12[%c0, %c0_0] : memref<28x512xbf16, #tpu.memory_space<vmem>>, vector<28x128xbf16>
    tpu.vector_store %arg12[%c0, %c0_0], %0 {strides = array<i32>} : memref<28x512xbf16, #tpu.memory_space<vmem>>, vector<28x128xbf16>,
    %c0_1 = arith.constant 0 : index
    %c384 = arith.constant 384 : index
    %2 = vector.load %arg12[%c0_1, %c384] : memref<28x512xbf16, #tpu.memory_space<vmem>>, vector<28x128xbf16>
    tpu.vector_store %arg12[%c0_1, %c384], %0 {strides = array<i32>} : memref<28x512xbf16, #tpu.memory_space<vmem>>, vector<28x128xbf16>,
    %c0_2 = arith.constant 0 : index
    %c0_3 = arith.constant 0 : index
    %c0_4 = arith.constant 0 : index
    %3 = vector.load %arg1[%c0_2, %c0_3, %c0_4] : memref<1x8x256xbf16, #tpu.memory_space<vmem>>, vector<1x8x256xbf16>
    %4 = vector.shape_cast %3 : vector<1x8x256xbf16> to vector<8x256xbf16>
    %c0_5 = arith.constant 0 : index
    %c128 = arith.constant 128 : index
    %5 = vector.load %arg12[%c0_5, %c128] : memref<28x512xbf16, #tpu.memory_space<vmem>>, vector<8x256xbf16>
    tpu.vector_store %arg12[%c0_5, %c128], %4 {strides = array<i32>} : memref<28x512xbf16, #tpu.memory_space<vmem>>, vector<8x256xbf16>,
    %c0_6 = arith.constant 0 : index
    %c0_7 = arith.constant 0 : index
    %c0_8 = arith.constant 0 : index
    %6 = vector.load %arg2[%c0_6, %c0_7, %c0_8] : memref<1x20x256xbf16, #tpu.memory_space<vmem>>, vector<1x20x256xbf16>
    %7 = vector.shape_cast %6 : vector<1x20x256xbf16> to vector<20x256xbf16>
    %c8 = arith.constant 8 : index
    %c128_9 = arith.constant 128 : index
    %8 = vector.load %arg12[%c8, %c128_9] : memref<28x512xbf16, #tpu.memory_space<vmem>>, vector<20x256xbf16>
    tpu.vector_store %arg12[%c8, %c128_9], %7 {strides = array<i32>} : memref<28x512xbf16, #tpu.memory_space<vmem>>, vector<20x256xbf16>,
    %9 = tpu.iota {dimensions = array<i32: 1>} : vector<1x256xi32>
    %c16_i32 = arith.constant 16 : i32
    %c0_i32 = arith.constant 0 : i32
    %10 = arith.cmpi eq, %c16_i32, %c0_i32 : i32
    %c1_i32 = arith.constant 1 : i32
    %11 = arith.select %10, %c1_i32, %c16_i32 : i32
    %12 = vector.broadcast %11 : i32 to vector<1x256xi32>
    %13 = arith.remsi %9, %12 : vector<1x256xi32>
    %c0_i32_10 = arith.constant 0 : i32
    %14 = vector.broadcast %c0_i32_10 : i32 to vector<1x256xi32>
    %15 = arith.cmpi ne, %13, %14 : vector<1x256xi32>
    %c0_i32_11 = arith.constant 0 : i32
    %16 = vector.broadcast %c0_i32_11 : i32 to vector<1x256xi32>
    %17 = arith.cmpi slt, %13, %16 : vector<1x256xi32>
    %c0_i32_12 = arith.constant 0 : i32
    %18 = arith.cmpi slt, %11, %c0_i32_12 : i32
    %19 = vector.broadcast %18 : i1 to vector<1x256xi1>
    %20 = vector.broadcast %19 : vector<1x256xi1> to vector<1x256xi1>
    %21 = arith.xori %17, %20 : vector<1x256xi1>
    %22 = arith.andi %21, %15 : vector<1x256xi1>
    %23 = vector.broadcast %11 : i32 to vector<1x256xi32>
    %24 = arith.addi %13, %23 : vector<1x256xi32>
    %25 = arith.select %22, %24, %13 : vector<1x256xi1>, vector<1x256xi32>
    %c0_i32_13 = arith.constant 0 : i32
    %26 = vector.broadcast %c0_i32_13 : i32 to vector<1x256xi32>
    %27 = arith.cmpi sgt, %25, %26 : vector<1x256xi32>
    %28 = arith.extui %27 : vector<1x256xi1> to vector<1x256xi32>
    %29 = arith.sitofp %28 : vector<1x256xi32> to vector<1x256xf32>
    %c15_i32 = arith.constant 15 : i32
    %30 = vector.broadcast %c15_i32 : i32 to vector<1x256xi32>
    %31 = arith.cmpi slt, %25, %30 : vector<1x256xi32>
    %32 = arith.extui %31 : vector<1x256xi1> to vector<1x256xi32>
    %33 = arith.sitofp %32 : vector<1x256xi32> to vector<1x256xf32>
    %cst_14 = arith.constant 0.000000e+00 : f32
    %34 = vector.broadcast %cst_14 : f32 to vector<8x256xf32>
    %c0_15 = arith.constant 0 : index
    %c111 = arith.constant 111 : index
    %35 = vector.load %arg12[%c0_15, %c111] : memref<28x512xbf16, #tpu.memory_space<vmem>>, vector<28x256xbf16>
    %c0_16 = arith.constant 0 : index
    %c0_17 = arith.constant 0 : index
    %c0_18 = arith.constant 0 : index
    %36 = vector.load %arg3[%c0_16, %c0_17, %c0_18] : memref<9x8x28xbf16, #tpu.memory_space<vmem>>, vector<1x8x28xbf16>
    %37 = vector.shape_cast %36 : vector<1x8x28xbf16> to vector<8x28xbf16>
    %cst_19 = arith.constant dense<0.000000e+00> : vector<8x256xf32>
    %38 = tpu.matmul %37, %35, %cst_19 {dimension_numbers = #tpu.dot_dimension_numbers<[1], [0], [0], [1], [0, 0, 1, 1], [], []>} : vector<8x28xbf16>, vector<28x256xbf16>, vector<8x256xf32> -> vector<8x256xf32>
    %39 = vector.broadcast %29 : vector<1x256xf32> to vector<8x256xf32>
    %40 = arith.mulf %38, %39 : vector<8x256xf32>
    %41 = arith.addf %34, %40 : vector<8x256xf32>
    %c0_20 = arith.constant 0 : index
    %c112 = arith.constant 112 : index
    %42 = vector.load %arg12[%c0_20, %c112] : memref<28x512xbf16, #tpu.memory_space<vmem>>, vector<28x256xbf16>
    %c1 = arith.constant 1 : index
    %c0_21 = arith.constant 0 : index
    %c0_22 = arith.constant 0 : index
    %43 = vector.load %arg3[%c1, %c0_21, %c0_22] : memref<9x8x28xbf16, #tpu.memory_space<vmem>>, vector<1x8x28xbf16>
    %44 = vector.shape_cast %43 : vector<1x8x28xbf16> to vector<8x28xbf16>
    %cst_23 = arith.constant dense<0.000000e+00> : vector<8x256xf32>
    %45 = tpu.matmul %44, %42, %cst_23 {dimension_numbers = #tpu.dot_dimension_numbers<[1], [0], [0], [1], [0, 0, 1, 1], [], []>} : vector<8x28xbf16>, vector<28x256xbf16>, vector<8x256xf32> -> vector<8x256xf32>
    %46 = arith.addf %41, %45 : vector<8x256xf32>
    %c0_24 = arith.constant 0 : index
    %c113 = arith.constant 113 : index
    %47 = vector.load %arg12[%c0_24, %c113] : memref<28x512xbf16, #tpu.memory_space<vmem>>, vector<28x256xbf16>
    %c2 = arith.constant 2 : index
    %c0_25 = arith.constant 0 : index
    %c0_26 = arith.constant 0 : index
    %48 = vector.load %arg3[%c2, %c0_25, %c0_26] : memref<9x8x28xbf16, #tpu.memory_space<vmem>>, vector<1x8x28xbf16>
    %49 = vector.shape_cast %48 : vector<1x8x28xbf16> to vector<8x28xbf16>
    %cst_27 = arith.constant dense<0.000000e+00> : vector<8x256xf32>
    %50 = tpu.matmul %49, %47, %cst_27 {dimension_numbers = #tpu.dot_dimension_numbers<[1], [0], [0], [1], [0, 0, 1, 1], [], []>} : vector<8x28xbf16>, vector<28x256xbf16>, vector<8x256xf32> -> vector<8x256xf32>
    %51 = vector.broadcast %33 : vector<1x256xf32> to vector<8x256xf32>
    %52 = arith.mulf %50, %51 : vector<8x256xf32>
    %53 = arith.addf %46, %52 : vector<8x256xf32>
    %c0_28 = arith.constant 0 : index
    %c127 = arith.constant 127 : index
    %54 = vector.load %arg12[%c0_28, %c127] : memref<28x512xbf16, #tpu.memory_space<vmem>>, vector<28x256xbf16>
    %c3 = arith.constant 3 : index
    %c0_29 = arith.constant 0 : index
    %c0_30 = arith.constant 0 : index
    %55 = vector.load %arg3[%c3, %c0_29, %c0_30] : memref<9x8x28xbf16, #tpu.memory_space<vmem>>, vector<1x8x28xbf16>
    %56 = vector.shape_cast %55 : vector<1x8x28xbf16> to vector<8x28xbf16>
    %cst_31 = arith.constant dense<0.000000e+00> : vector<8x256xf32>
    %57 = tpu.matmul %56, %54, %cst_31 {dimension_numbers = #tpu.dot_dimension_numbers<[1], [0], [0], [1], [0, 0, 1, 1], [], []>} : vector<8x28xbf16>, vector<28x256xbf16>, vector<8x256xf32> -> vector<8x256xf32>
    %58 = vector.broadcast %29 : vector<1x256xf32> to vector<8x256xf32>
    %59 = arith.mulf %57, %58 : vector<8x256xf32>
    %60 = arith.addf %53, %59 : vector<8x256xf32>
    %c0_32 = arith.constant 0 : index
    %c128_33 = arith.constant 128 : index
    %61 = vector.load %arg12[%c0_32, %c128_33] : memref<28x512xbf16, #tpu.memory_space<vmem>>, vector<28x256xbf16>
    %c4 = arith.constant 4 : index
    %c0_34 = arith.constant 0 : index
    %c0_35 = arith.constant 0 : index
    %62 = vector.load %arg3[%c4, %c0_34, %c0_35] : memref<9x8x28xbf16, #tpu.memory_space<vmem>>, vector<1x8x28xbf16>
    %63 = vector.shape_cast %62 : vector<1x8x28xbf16> to vector<8x28xbf16>
    %cst_36 = arith.constant dense<0.000000e+00> : vector<8x256xf32>
    %64 = tpu.matmul %63, %61, %cst_36 {dimension_numbers = #tpu.dot_dimension_numbers<[1], [0], [0], [1], [0, 0, 1, 1], [], []>} : vector<8x28xbf16>, vector<28x256xbf16>, vector<8x256xf32> -> vector<8x256xf32>
    %65 = arith.addf %60, %64 : vector<8x256xf32>
    %c0_37 = arith.constant 0 : index
    %c129 = arith.constant 129 : index
    %66 = vector.load %arg12[%c0_37, %c129] : memref<28x512xbf16, #tpu.memory_space<vmem>>, vector<28x256xbf16>
    %c5 = arith.constant 5 : index
    %c0_38 = arith.constant 0 : index
    %c0_39 = arith.constant 0 : index
    %67 = vector.load %arg3[%c5, %c0_38, %c0_39] : memref<9x8x28xbf16, #tpu.memory_space<vmem>>, vector<1x8x28xbf16>
    %68 = vector.shape_cast %67 : vector<1x8x28xbf16> to vector<8x28xbf16>
    %cst_40 = arith.constant dense<0.000000e+00> : vector<8x256xf32>
    %69 = tpu.matmul %68, %66, %cst_40 {dimension_numbers = #tpu.dot_dimension_numbers<[1], [0], [0], [1], [0, 0, 1, 1], [], []>} : vector<8x28xbf16>, vector<28x256xbf16>, vector<8x256xf32> -> vector<8x256xf32>
    %70 = vector.broadcast %33 : vector<1x256xf32> to vector<8x256xf32>
    %71 = arith.mulf %69, %70 : vector<8x256xf32>
    %72 = arith.addf %65, %71 : vector<8x256xf32>
    %c0_41 = arith.constant 0 : index
    %c143 = arith.constant 143 : index
    %73 = vector.load %arg12[%c0_41, %c143] : memref<28x512xbf16, #tpu.memory_space<vmem>>, vector<28x256xbf16>
    %c6 = arith.constant 6 : index
    %c0_42 = arith.constant 0 : index
    %c0_43 = arith.constant 0 : index
    %74 = vector.load %arg3[%c6, %c0_42, %c0_43] : memref<9x8x28xbf16, #tpu.memory_space<vmem>>, vector<1x8x28xbf16>
    %75 = vector.shape_cast %74 : vector<1x8x28xbf16> to vector<8x28xbf16>
    %cst_44 = arith.constant dense<0.000000e+00> : vector<8x256xf32>
    %76 = tpu.matmul %75, %73, %cst_44 {dimension_numbers = #tpu.dot_dimension_numbers<[1], [0], [0], [1], [0, 0, 1, 1], [], []>} : vector<8x28xbf16>, vector<28x256xbf16>, vector<8x256xf32> -> vector<8x256xf32>
    %77 = vector.broadcast %29 : vector<1x256xf32> to vector<8x256xf32>
    %78 = arith.mulf %76, %77 : vector<8x256xf32>
    %79 = arith.addf %72, %78 : vector<8x256xf32>
    %c0_45 = arith.constant 0 : index
    %c144 = arith.constant 144 : index
    %80 = vector.load %arg12[%c0_45, %c144] : memref<28x512xbf16, #tpu.memory_space<vmem>>, vector<28x256xbf16>
    %c7 = arith.constant 7 : index
    %c0_46 = arith.constant 0 : index
    %c0_47 = arith.constant 0 : index
    %81 = vector.load %arg3[%c7, %c0_46, %c0_47] : memref<9x8x28xbf16, #tpu.memory_space<vmem>>, vector<1x8x28xbf16>
    %82 = vector.shape_cast %81 : vector<1x8x28xbf16> to vector<8x28xbf16>
    %cst_48 = arith.constant dense<0.000000e+00> : vector<8x256xf32>
    %83 = tpu.matmul %82, %80, %cst_48 {dimension_numbers = #tpu.dot_dimension_numbers<[1], [0], [0], [1], [0, 0, 1, 1], [], []>} : vector<8x28xbf16>, vector<28x256xbf16>, vector<8x256xf32> -> vector<8x256xf32>
    %84 = arith.addf %79, %83 : vector<8x256xf32>
    %c0_49 = arith.constant 0 : index
    %c145 = arith.constant 145 : index
    %85 = vector.load %arg12[%c0_49, %c145] : memref<28x512xbf16, #tpu.memory_space<vmem>>, vector<28x256xbf16>
    %c8_50 = arith.constant 8 : index
    %c0_51 = arith.constant 0 : index
    %c0_52 = arith.constant 0 : index
    %86 = vector.load %arg3[%c8_50, %c0_51, %c0_52] : memref<9x8x28xbf16, #tpu.memory_space<vmem>>, vector<1x8x28xbf16>
    %87 = vector.shape_cast %86 : vector<1x8x28xbf16> to vector<8x28xbf16>
    %cst_53 = arith.constant dense<0.000000e+00> : vector<8x256xf32>
    %88 = tpu.matmul %87, %85, %cst_53 {dimension_numbers = #tpu.dot_dimension_numbers<[1], [0], [0], [1], [0, 0, 1, 1], [], []>} : vector<8x28xbf16>, vector<28x256xbf16>, vector<8x256xf32> -> vector<8x256xf32>
    %89 = vector.broadcast %33 : vector<1x256xf32> to vector<8x256xf32>
    %90 = arith.mulf %88, %89 : vector<8x256xf32>
    %91 = arith.addf %84, %90 : vector<8x256xf32>
    %c0_54 = arith.constant 0 : index
    %c0_55 = arith.constant 0 : index
    %92 = vector.load %arg4[%c0_54, %c0_55] : memref<8x1xf32, #tpu.memory_space<vmem>>, vector<8x1xf32>
    %93 = vector.broadcast %92 : vector<8x1xf32> to vector<8x256xf32>
    %94 = arith.addf %91, %93 : vector<8x256xf32>
    %cst_56 = arith.constant 0.000000e+00 : f32
    %95 = vector.broadcast %cst_56 : f32 to vector<8x256xf32>
    %96 = arith.maximumf %94, %95 : vector<8x256xf32>
    %97 = arith.truncf %96 : vector<8x256xf32> to vector<8x256xbf16>
    %c0_57 = arith.constant 0 : index
    %c128_58 = arith.constant 128 : index
    %98 = vector.load %arg12[%c0_57, %c128_58] : memref<28x512xbf16, #tpu.memory_space<vmem>>, vector<8x256xbf16>
    tpu.vector_store %arg12[%c0_57, %c128_58], %97 {strides = array<i32>} : memref<28x512xbf16, #tpu.memory_space<vmem>>, vector<8x256xbf16>,
    %cst_59 = arith.constant 0.000000e+00 : f32
    %99 = vector.broadcast %cst_59 : f32 to vector<8x256xf32>
    %c0_60 = arith.constant 0 : index
    %c111_61 = arith.constant 111 : index
    %100 = vector.load %arg12[%c0_60, %c111_61] : memref<28x512xbf16, #tpu.memory_space<vmem>>, vector<8x256xbf16>
    %c0_62 = arith.constant 0 : index
    %c0_63 = arith.constant 0 : index
    %c0_64 = arith.constant 0 : index
    %101 = vector.load %arg5[%c0_62, %c0_63, %c0_64] : memref<9x8x8xbf16, #tpu.memory_space<vmem>>, vector<1x8x8xbf16>
    %102 = vector.shape_cast %101 : vector<1x8x8xbf16> to vector<8x8xbf16>
    %cst_65 = arith.constant dense<0.000000e+00> : vector<8x256xf32>
    %103 = tpu.matmul %102, %100, %cst_65 {dimension_numbers = #tpu.dot_dimension_numbers<[1], [0], [0], [1], [0, 0, 1, 1], [], []>} : vector<8x8xbf16>, vector<8x256xbf16>, vector<8x256xf32> -> vector<8x256xf32>
    %104 = vector.broadcast %29 : vector<1x256xf32> to vector<8x256xf32>
    %105 = arith.mulf %103, %104 : vector<8x256xf32>
    %106 = arith.addf %99, %105 : vector<8x256xf32>
    %c0_66 = arith.constant 0 : index
    %c112_67 = arith.constant 112 : index
    %107 = vector.load %arg12[%c0_66, %c112_67] : memref<28x512xbf16, #tpu.memory_space<vmem>>, vector<8x256xbf16>
    %c1_68 = arith.constant 1 : index
    %c0_69 = arith.constant 0 : index
    %c0_70 = arith.constant 0 : index
    %108 = vector.load %arg5[%c1_68, %c0_69, %c0_70] : memref<9x8x8xbf16, #tpu.memory_space<vmem>>, vector<1x8x8xbf16>
    %109 = vector.shape_cast %108 : vector<1x8x8xbf16> to vector<8x8xbf16>
    %cst_71 = arith.constant dense<0.000000e+00> : vector<8x256xf32>
    %110 = tpu.matmul %109, %107, %cst_71 {dimension_numbers = #tpu.dot_dimension_numbers<[1], [0], [0], [1], [0, 0, 1, 1], [], []>} : vector<8x8xbf16>, vector<8x256xbf16>, vector<8x256xf32> -> vector<8x256xf32>
    %111 = arith.addf %106, %110 : vector<8x256xf32>
    %c0_72 = arith.constant 0 : index
    %c113_73 = arith.constant 113 : index
    %112 = vector.load %arg12[%c0_72, %c113_73] : memref<28x512xbf16, #tpu.memory_space<vmem>>, vector<8x256xbf16>
    %c2_74 = arith.constant 2 : index
    %c0_75 = arith.constant 0 : index
    %c0_76 = arith.constant 0 : index
    %113 = vector.load %arg5[%c2_74, %c0_75, %c0_76] : memref<9x8x8xbf16, #tpu.memory_space<vmem>>, vector<1x8x8xbf16>
    %114 = vector.shape_cast %113 : vector<1x8x8xbf16> to vector<8x8xbf16>
    %cst_77 = arith.constant dense<0.000000e+00> : vector<8x256xf32>
    %115 = tpu.matmul %114, %112, %cst_77 {dimension_numbers = #tpu.dot_dimension_numbers<[1], [0], [0], [1], [0, 0, 1, 1], [], []>} : vector<8x8xbf16>, vector<8x256xbf16>, vector<8x256xf32> -> vector<8x256xf32>
    %116 = vector.broadcast %33 : vector<1x256xf32> to vector<8x256xf32>
    %117 = arith.mulf %115, %116 : vector<8x256xf32>
    %118 = arith.addf %111, %117 : vector<8x256xf32>
    %c0_78 = arith.constant 0 : index
    %c127_79 = arith.constant 127 : index
    %119 = vector.load %arg12[%c0_78, %c127_79] : memref<28x512xbf16, #tpu.memory_space<vmem>>, vector<8x256xbf16>
    %c3_80 = arith.constant 3 : index
    %c0_81 = arith.constant 0 : index
    %c0_82 = arith.constant 0 : index
    %120 = vector.load %arg5[%c3_80, %c0_81, %c0_82] : memref<9x8x8xbf16, #tpu.memory_space<vmem>>, vector<1x8x8xbf16>
    %121 = vector.shape_cast %120 : vector<1x8x8xbf16> to vector<8x8xbf16>
    %cst_83 = arith.constant dense<0.000000e+00> : vector<8x256xf32>
    %122 = tpu.matmul %121, %119, %cst_83 {dimension_numbers = #tpu.dot_dimension_numbers<[1], [0], [0], [1], [0, 0, 1, 1], [], []>} : vector<8x8xbf16>, vector<8x256xbf16>, vector<8x256xf32> -> vector<8x256xf32>
    %123 = vector.broadcast %29 : vector<1x256xf32> to vector<8x256xf32>
    %124 = arith.mulf %122, %123 : vector<8x256xf32>
    %125 = arith.addf %118, %124 : vector<8x256xf32>
    %c0_84 = arith.constant 0 : index
    %c128_85 = arith.constant 128 : index
    %126 = vector.load %arg12[%c0_84, %c128_85] : memref<28x512xbf16, #tpu.memory_space<vmem>>, vector<8x256xbf16>
    %c4_86 = arith.constant 4 : index
    %c0_87 = arith.constant 0 : index
    %c0_88 = arith.constant 0 : index
    %127 = vector.load %arg5[%c4_86, %c0_87, %c0_88] : memref<9x8x8xbf16, #tpu.memory_space<vmem>>, vector<1x8x8xbf16>
    %128 = vector.shape_cast %127 : vector<1x8x8xbf16> to vector<8x8xbf16>
    %cst_89 = arith.constant dense<0.000000e+00> : vector<8x256xf32>
    %129 = tpu.matmul %128, %126, %cst_89 {dimension_numbers = #tpu.dot_dimension_numbers<[1], [0], [0], [1], [0, 0, 1, 1], [], []>} : vector<8x8xbf16>, vector<8x256xbf16>, vector<8x256xf32> -> vector<8x256xf32>
    %130 = arith.addf %125, %129 : vector<8x256xf32>
    %c0_90 = arith.constant 0 : index
    %c129_91 = arith.constant 129 : index
    %131 = vector.load %arg12[%c0_90, %c129_91] : memref<28x512xbf16, #tpu.memory_space<vmem>>, vector<8x256xbf16>
    %c5_92 = arith.constant 5 : index
    %c0_93 = arith.constant 0 : index
    %c0_94 = arith.constant 0 : index
    %132 = vector.load %arg5[%c5_92, %c0_93, %c0_94] : memref<9x8x8xbf16, #tpu.memory_space<vmem>>, vector<1x8x8xbf16>
    %133 = vector.shape_cast %132 : vector<1x8x8xbf16> to vector<8x8xbf16>
    %cst_95 = arith.constant dense<0.000000e+00> : vector<8x256xf32>
    %134 = tpu.matmul %133, %131, %cst_95 {dimension_numbers = #tpu.dot_dimension_numbers<[1], [0], [0], [1], [0, 0, 1, 1], [], []>} : vector<8x8xbf16>, vector<8x256xbf16>, vector<8x256xf32> -> vector<8x256xf32>
    %135 = vector.broadcast %33 : vector<1x256xf32> to vector<8x256xf32>
    %136 = arith.mulf %134, %135 : vector<8x256xf32>
    %137 = arith.addf %130, %136 : vector<8x256xf32>
    %c0_96 = arith.constant 0 : index
    %c143_97 = arith.constant 143 : index
    %138 = vector.load %arg12[%c0_96, %c143_97] : memref<28x512xbf16, #tpu.memory_space<vmem>>, vector<8x256xbf16>
    %c6_98 = arith.constant 6 : index
    %c0_99 = arith.constant 0 : index
    %c0_100 = arith.constant 0 : index
    %139 = vector.load %arg5[%c6_98, %c0_99, %c0_100] : memref<9x8x8xbf16, #tpu.memory_space<vmem>>, vector<1x8x8xbf16>
    %140 = vector.shape_cast %139 : vector<1x8x8xbf16> to vector<8x8xbf16>
    %cst_101 = arith.constant dense<0.000000e+00> : vector<8x256xf32>
    %141 = tpu.matmul %140, %138, %cst_101 {dimension_numbers = #tpu.dot_dimension_numbers<[1], [0], [0], [1], [0, 0, 1, 1], [], []>} : vector<8x8xbf16>, vector<8x256xbf16>, vector<8x256xf32> -> vector<8x256xf32>
    %142 = vector.broadcast %29 : vector<1x256xf32> to vector<8x256xf32>
    %143 = arith.mulf %141, %142 : vector<8x256xf32>
    %144 = arith.addf %137, %143 : vector<8x256xf32>
    %c0_102 = arith.constant 0 : index
    %c144_103 = arith.constant 144 : index
    %145 = vector.load %arg12[%c0_102, %c144_103] : memref<28x512xbf16, #tpu.memory_space<vmem>>, vector<8x256xbf16>
    %c7_104 = arith.constant 7 : index
    %c0_105 = arith.constant 0 : index
    %c0_106 = arith.constant 0 : index
    %146 = vector.load %arg5[%c7_104, %c0_105, %c0_106] : memref<9x8x8xbf16, #tpu.memory_space<vmem>>, vector<1x8x8xbf16>
    %147 = vector.shape_cast %146 : vector<1x8x8xbf16> to vector<8x8xbf16>
    %cst_107 = arith.constant dense<0.000000e+00> : vector<8x256xf32>
    %148 = tpu.matmul %147, %145, %cst_107 {dimension_numbers = #tpu.dot_dimension_numbers<[1], [0], [0], [1], [0, 0, 1, 1], [], []>} : vector<8x8xbf16>, vector<8x256xbf16>, vector<8x256xf32> -> vector<8x256xf32>
    %149 = arith.addf %144, %148 : vector<8x256xf32>
    %c0_108 = arith.constant 0 : index
    %c145_109 = arith.constant 145 : index
    %150 = vector.load %arg12[%c0_108, %c145_109] : memref<28x512xbf16, #tpu.memory_space<vmem>>, vector<8x256xbf16>
    %c8_110 = arith.constant 8 : index
    %c0_111 = arith.constant 0 : index
    %c0_112 = arith.constant 0 : index
    %151 = vector.load %arg5[%c8_110, %c0_111, %c0_112] : memref<9x8x8xbf16, #tpu.memory_space<vmem>>, vector<1x8x8xbf16>
    %152 = vector.shape_cast %151 : vector<1x8x8xbf16> to vector<8x8xbf16>
    %cst_113 = arith.constant dense<0.000000e+00> : vector<8x256xf32>
    %153 = tpu.matmul %152, %150, %cst_113 {dimension_numbers = #tpu.dot_dimension_numbers<[1], [0], [0], [1], [0, 0, 1, 1], [], []>} : vector<8x8xbf16>, vector<8x256xbf16>, vector<8x256xf32> -> vector<8x256xf32>
    %154 = vector.broadcast %33 : vector<1x256xf32> to vector<8x256xf32>
    %155 = arith.mulf %153, %154 : vector<8x256xf32>
    %156 = arith.addf %149, %155 : vector<8x256xf32>
    %c0_114 = arith.constant 0 : index
    %c0_115 = arith.constant 0 : index
    %157 = vector.load %arg6[%c0_114, %c0_115] : memref<8x1xf32, #tpu.memory_space<vmem>>, vector<8x1xf32>
    %158 = vector.broadcast %157 : vector<8x1xf32> to vector<8x256xf32>
    %159 = arith.addf %156, %158 : vector<8x256xf32>
    %cst_116 = arith.constant 0.000000e+00 : f32
    %160 = vector.broadcast %cst_116 : f32 to vector<8x256xf32>
    %161 = arith.maximumf %159, %160 : vector<8x256xf32>
    %162 = arith.truncf %161 : vector<8x256xf32> to vector<8x256xbf16>
    %c0_117 = arith.constant 0 : index
    %c128_118 = arith.constant 128 : index
    %163 = vector.load %arg12[%c0_117, %c128_118] : memref<28x512xbf16, #tpu.memory_space<vmem>>, vector<8x256xbf16>
    tpu.vector_store %arg12[%c0_117, %c128_118], %162 {strides = array<i32>} : memref<28x512xbf16, #tpu.memory_space<vmem>>, vector<8x256xbf16>,
    %cst_119 = arith.constant 0.000000e+00 : f32
    %164 = vector.broadcast %cst_119 : f32 to vector<8x256xf32>
    %c0_120 = arith.constant 0 : index
    %c111_121 = arith.constant 111 : index
    %165 = vector.load %arg12[%c0_120, %c111_121] : memref<28x512xbf16, #tpu.memory_space<vmem>>, vector<8x256xbf16>
    %c0_122 = arith.constant 0 : index
    %c0_123 = arith.constant 0 : index
    %c0_124 = arith.constant 0 : index
    %166 = vector.load %arg7[%c0_122, %c0_123, %c0_124] : memref<9x8x8xbf16, #tpu.memory_space<vmem>>, vector<1x8x8xbf16>
    %167 = vector.shape_cast %166 : vector<1x8x8xbf16> to vector<8x8xbf16>
    %cst_125 = arith.constant dense<0.000000e+00> : vector<8x256xf32>
    %168 = tpu.matmul %167, %165, %cst_125 {dimension_numbers = #tpu.dot_dimension_numbers<[1], [0], [0], [1], [0, 0, 1, 1], [], []>} : vector<8x8xbf16>, vector<8x256xbf16>, vector<8x256xf32> -> vector<8x256xf32>
    %169 = vector.broadcast %29 : vector<1x256xf32> to vector<8x256xf32>
    %170 = arith.mulf %168, %169 : vector<8x256xf32>
    %171 = arith.addf %164, %170 : vector<8x256xf32>
    %c0_126 = arith.constant 0 : index
    %c112_127 = arith.constant 112 : index
    %172 = vector.load %arg12[%c0_126, %c112_127] : memref<28x512xbf16, #tpu.memory_space<vmem>>, vector<8x256xbf16>
    %c1_128 = arith.constant 1 : index
    %c0_129 = arith.constant 0 : index
    %c0_130 = arith.constant 0 : index
    %173 = vector.load %arg7[%c1_128, %c0_129, %c0_130] : memref<9x8x8xbf16, #tpu.memory_space<vmem>>, vector<1x8x8xbf16>
    %174 = vector.shape_cast %173 : vector<1x8x8xbf16> to vector<8x8xbf16>
    %cst_131 = arith.constant dense<0.000000e+00> : vector<8x256xf32>
    %175 = tpu.matmul %174, %172, %cst_131 {dimension_numbers = #tpu.dot_dimension_numbers<[1], [0], [0], [1], [0, 0, 1, 1], [], []>} : vector<8x8xbf16>, vector<8x256xbf16>, vector<8x256xf32> -> vector<8x256xf32>
    %176 = arith.addf %171, %175 : vector<8x256xf32>
    %c0_132 = arith.constant 0 : index
    %c113_133 = arith.constant 113 : index
    %177 = vector.load %arg12[%c0_132, %c113_133] : memref<28x512xbf16, #tpu.memory_space<vmem>>, vector<8x256xbf16>
    %c2_134 = arith.constant 2 : index
    %c0_135 = arith.constant 0 : index
    %c0_136 = arith.constant 0 : index
    %178 = vector.load %arg7[%c2_134, %c0_135, %c0_136] : memref<9x8x8xbf16, #tpu.memory_space<vmem>>, vector<1x8x8xbf16>
    %179 = vector.shape_cast %178 : vector<1x8x8xbf16> to vector<8x8xbf16>
    %cst_137 = arith.constant dense<0.000000e+00> : vector<8x256xf32>
    %180 = tpu.matmul %179, %177, %cst_137 {dimension_numbers = #tpu.dot_dimension_numbers<[1], [0], [0], [1], [0, 0, 1, 1], [], []>} : vector<8x8xbf16>, vector<8x256xbf16>, vector<8x256xf32> -> vector<8x256xf32>
    %181 = vector.broadcast %33 : vector<1x256xf32> to vector<8x256xf32>
    %182 = arith.mulf %180, %181 : vector<8x256xf32>
    %183 = arith.addf %176, %182 : vector<8x256xf32>
    %c0_138 = arith.constant 0 : index
    %c127_139 = arith.constant 127 : index
    %184 = vector.load %arg12[%c0_138, %c127_139] : memref<28x512xbf16, #tpu.memory_space<vmem>>, vector<8x256xbf16>
    %c3_140 = arith.constant 3 : index
    %c0_141 = arith.constant 0 : index
    %c0_142 = arith.constant 0 : index
    %185 = vector.load %arg7[%c3_140, %c0_141, %c0_142] : memref<9x8x8xbf16, #tpu.memory_space<vmem>>, vector<1x8x8xbf16>
    %186 = vector.shape_cast %185 : vector<1x8x8xbf16> to vector<8x8xbf16>
    %cst_143 = arith.constant dense<0.000000e+00> : vector<8x256xf32>
    %187 = tpu.matmul %186, %184, %cst_143 {dimension_numbers = #tpu.dot_dimension_numbers<[1], [0], [0], [1], [0, 0, 1, 1], [], []>} : vector<8x8xbf16>, vector<8x256xbf16>, vector<8x256xf32> -> vector<8x256xf32>
    %188 = vector.broadcast %29 : vector<1x256xf32> to vector<8x256xf32>
    %189 = arith.mulf %187, %188 : vector<8x256xf32>
    %190 = arith.addf %183, %189 : vector<8x256xf32>
    %c0_144 = arith.constant 0 : index
    %c128_145 = arith.constant 128 : index
    %191 = vector.load %arg12[%c0_144, %c128_145] : memref<28x512xbf16, #tpu.memory_space<vmem>>, vector<8x256xbf16>
    %c4_146 = arith.constant 4 : index
    %c0_147 = arith.constant 0 : index
    %c0_148 = arith.constant 0 : index
    %192 = vector.load %arg7[%c4_146, %c0_147, %c0_148] : memref<9x8x8xbf16, #tpu.memory_space<vmem>>, vector<1x8x8xbf16>
    %193 = vector.shape_cast %192 : vector<1x8x8xbf16> to vector<8x8xbf16>
    %cst_149 = arith.constant dense<0.000000e+00> : vector<8x256xf32>
    %194 = tpu.matmul %193, %191, %cst_149 {dimension_numbers = #tpu.dot_dimension_numbers<[1], [0], [0], [1], [0, 0, 1, 1], [], []>} : vector<8x8xbf16>, vector<8x256xbf16>, vector<8x256xf32> -> vector<8x256xf32>
    %195 = arith.addf %190, %194 : vector<8x256xf32>
    %c0_150 = arith.constant 0 : index
    %c129_151 = arith.constant 129 : index
    %196 = vector.load %arg12[%c0_150, %c129_151] : memref<28x512xbf16, #tpu.memory_space<vmem>>, vector<8x256xbf16>
    %c5_152 = arith.constant 5 : index
    %c0_153 = arith.constant 0 : index
    %c0_154 = arith.constant 0 : index
    %197 = vector.load %arg7[%c5_152, %c0_153, %c0_154] : memref<9x8x8xbf16, #tpu.memory_space<vmem>>, vector<1x8x8xbf16>
    %198 = vector.shape_cast %197 : vector<1x8x8xbf16> to vector<8x8xbf16>
    %cst_155 = arith.constant dense<0.000000e+00> : vector<8x256xf32>
    %199 = tpu.matmul %198, %196, %cst_155 {dimension_numbers = #tpu.dot_dimension_numbers<[1], [0], [0], [1], [0, 0, 1, 1], [], []>} : vector<8x8xbf16>, vector<8x256xbf16>, vector<8x256xf32> -> vector<8x256xf32>
    %200 = vector.broadcast %33 : vector<1x256xf32> to vector<8x256xf32>
    %201 = arith.mulf %199, %200 : vector<8x256xf32>
    %202 = arith.addf %195, %201 : vector<8x256xf32>
    %c0_156 = arith.constant 0 : index
    %c143_157 = arith.constant 143 : index
    %203 = vector.load %arg12[%c0_156, %c143_157] : memref<28x512xbf16, #tpu.memory_space<vmem>>, vector<8x256xbf16>
    %c6_158 = arith.constant 6 : index
    %c0_159 = arith.constant 0 : index
    %c0_160 = arith.constant 0 : index
    %204 = vector.load %arg7[%c6_158, %c0_159, %c0_160] : memref<9x8x8xbf16, #tpu.memory_space<vmem>>, vector<1x8x8xbf16>
    %205 = vector.shape_cast %204 : vector<1x8x8xbf16> to vector<8x8xbf16>
    %cst_161 = arith.constant dense<0.000000e+00> : vector<8x256xf32>
    %206 = tpu.matmul %205, %203, %cst_161 {dimension_numbers = #tpu.dot_dimension_numbers<[1], [0], [0], [1], [0, 0, 1, 1], [], []>} : vector<8x8xbf16>, vector<8x256xbf16>, vector<8x256xf32> -> vector<8x256xf32>
    %207 = vector.broadcast %29 : vector<1x256xf32> to vector<8x256xf32>
    %208 = arith.mulf %206, %207 : vector<8x256xf32>
    %209 = arith.addf %202, %208 : vector<8x256xf32>
    %c0_162 = arith.constant 0 : index
    %c144_163 = arith.constant 144 : index
    %210 = vector.load %arg12[%c0_162, %c144_163] : memref<28x512xbf16, #tpu.memory_space<vmem>>, vector<8x256xbf16>
    %c7_164 = arith.constant 7 : index
    %c0_165 = arith.constant 0 : index
    %c0_166 = arith.constant 0 : index
    %211 = vector.load %arg7[%c7_164, %c0_165, %c0_166] : memref<9x8x8xbf16, #tpu.memory_space<vmem>>, vector<1x8x8xbf16>
    %212 = vector.shape_cast %211 : vector<1x8x8xbf16> to vector<8x8xbf16>
    %cst_167 = arith.constant dense<0.000000e+00> : vector<8x256xf32>
    %213 = tpu.matmul %212, %210, %cst_167 {dimension_numbers = #tpu.dot_dimension_numbers<[1], [0], [0], [1], [0, 0, 1, 1], [], []>} : vector<8x8xbf16>, vector<8x256xbf16>, vector<8x256xf32> -> vector<8x256xf32>
    %214 = arith.addf %209, %213 : vector<8x256xf32>
    %c0_168 = arith.constant 0 : index
    %c145_169 = arith.constant 145 : index
    %215 = vector.load %arg12[%c0_168, %c145_169] : memref<28x512xbf16, #tpu.memory_space<vmem>>, vector<8x256xbf16>
    %c8_170 = arith.constant 8 : index
    %c0_171 = arith.constant 0 : index
    %c0_172 = arith.constant 0 : index
    %216 = vector.load %arg7[%c8_170, %c0_171, %c0_172] : memref<9x8x8xbf16, #tpu.memory_space<vmem>>, vector<1x8x8xbf16>
    %217 = vector.shape_cast %216 : vector<1x8x8xbf16> to vector<8x8xbf16>
    %cst_173 = arith.constant dense<0.000000e+00> : vector<8x256xf32>
    %218 = tpu.matmul %217, %215, %cst_173 {dimension_numbers = #tpu.dot_dimension_numbers<[1], [0], [0], [1], [0, 0, 1, 1], [], []>} : vector<8x8xbf16>, vector<8x256xbf16>, vector<8x256xf32> -> vector<8x256xf32>
    %219 = vector.broadcast %33 : vector<1x256xf32> to vector<8x256xf32>
    %220 = arith.mulf %218, %219 : vector<8x256xf32>
    %221 = arith.addf %214, %220 : vector<8x256xf32>
    %c0_174 = arith.constant 0 : index
    %c0_175 = arith.constant 0 : index
    %222 = vector.load %arg8[%c0_174, %c0_175] : memref<8x1xf32, #tpu.memory_space<vmem>>, vector<8x1xf32>
    %223 = vector.broadcast %222 : vector<8x1xf32> to vector<8x256xf32>
    %224 = arith.addf %221, %223 : vector<8x256xf32>
    %cst_176 = arith.constant 0.000000e+00 : f32
    %225 = vector.broadcast %cst_176 : f32 to vector<8x256xf32>
    %226 = arith.maximumf %224, %225 : vector<8x256xf32>
    %227 = arith.truncf %226 : vector<8x256xf32> to vector<8x256xbf16>
    %c0_177 = arith.constant 0 : index
    %c128_178 = arith.constant 128 : index
    %228 = vector.load %arg12[%c0_177, %c128_178] : memref<28x512xbf16, #tpu.memory_space<vmem>>, vector<8x256xbf16>
    tpu.vector_store %arg12[%c0_177, %c128_178], %227 {strides = array<i32>} : memref<28x512xbf16, #tpu.memory_space<vmem>>, vector<8x256xbf16>,
    %cst_179 = arith.constant 0.000000e+00 : f32
    %229 = vector.broadcast %cst_179 : f32 to vector<8x256xf32>
    %c0_180 = arith.constant 0 : index
    %c111_181 = arith.constant 111 : index
    %230 = vector.load %arg12[%c0_180, %c111_181] : memref<28x512xbf16, #tpu.memory_space<vmem>>, vector<8x256xbf16>
    %c0_182 = arith.constant 0 : index
    %c0_183 = arith.constant 0 : index
    %c0_184 = arith.constant 0 : index
    %231 = vector.load %arg9[%c0_182, %c0_183, %c0_184] : memref<9x8x8xbf16, #tpu.memory_space<vmem>>, vector<1x8x8xbf16>
    %232 = vector.shape_cast %231 : vector<1x8x8xbf16> to vector<8x8xbf16>
    %cst_185 = arith.constant dense<0.000000e+00> : vector<8x256xf32>
    %233 = tpu.matmul %232, %230, %cst_185 {dimension_numbers = #tpu.dot_dimension_numbers<[1], [0], [0], [1], [0, 0, 1, 1], [], []>} : vector<8x8xbf16>, vector<8x256xbf16>, vector<8x256xf32> -> vector<8x256xf32>
    %234 = vector.broadcast %29 : vector<1x256xf32> to vector<8x256xf32>
    %235 = arith.mulf %233, %234 : vector<8x256xf32>
    %236 = arith.addf %229, %235 : vector<8x256xf32>
    %c0_186 = arith.constant 0 : index
    %c112_187 = arith.constant 112 : index
    %237 = vector.load %arg12[%c0_186, %c112_187] : memref<28x512xbf16, #tpu.memory_space<vmem>>, vector<8x256xbf16>
    %c1_188 = arith.constant 1 : index
    %c0_189 = arith.constant 0 : index
    %c0_190 = arith.constant 0 : index
    %238 = vector.load %arg9[%c1_188, %c0_189, %c0_190] : memref<9x8x8xbf16, #tpu.memory_space<vmem>>, vector<1x8x8xbf16>
    %239 = vector.shape_cast %238 : vector<1x8x8xbf16> to vector<8x8xbf16>
    %cst_191 = arith.constant dense<0.000000e+00> : vector<8x256xf32>
    %240 = tpu.matmul %239, %237, %cst_191 {dimension_numbers = #tpu.dot_dimension_numbers<[1], [0], [0], [1], [0, 0, 1, 1], [], []>} : vector<8x8xbf16>, vector<8x256xbf16>, vector<8x256xf32> -> vector<8x256xf32>
    %241 = arith.addf %236, %240 : vector<8x256xf32>
    %c0_192 = arith.constant 0 : index
    %c113_193 = arith.constant 113 : index
    %242 = vector.load %arg12[%c0_192, %c113_193] : memref<28x512xbf16, #tpu.memory_space<vmem>>, vector<8x256xbf16>
    %c2_194 = arith.constant 2 : index
    %c0_195 = arith.constant 0 : index
    %c0_196 = arith.constant 0 : index
    %243 = vector.load %arg9[%c2_194, %c0_195, %c0_196] : memref<9x8x8xbf16, #tpu.memory_space<vmem>>, vector<1x8x8xbf16>
    %244 = vector.shape_cast %243 : vector<1x8x8xbf16> to vector<8x8xbf16>
    %cst_197 = arith.constant dense<0.000000e+00> : vector<8x256xf32>
    %245 = tpu.matmul %244, %242, %cst_197 {dimension_numbers = #tpu.dot_dimension_numbers<[1], [0], [0], [1], [0, 0, 1, 1], [], []>} : vector<8x8xbf16>, vector<8x256xbf16>, vector<8x256xf32> -> vector<8x256xf32>
    %246 = vector.broadcast %33 : vector<1x256xf32> to vector<8x256xf32>
    %247 = arith.mulf %245, %246 : vector<8x256xf32>
    %248 = arith.addf %241, %247 : vector<8x256xf32>
    %c0_198 = arith.constant 0 : index
    %c127_199 = arith.constant 127 : index
    %249 = vector.load %arg12[%c0_198, %c127_199] : memref<28x512xbf16, #tpu.memory_space<vmem>>, vector<8x256xbf16>
    %c3_200 = arith.constant 3 : index
    %c0_201 = arith.constant 0 : index
    %c0_202 = arith.constant 0 : index
    %250 = vector.load %arg9[%c3_200, %c0_201, %c0_202] : memref<9x8x8xbf16, #tpu.memory_space<vmem>>, vector<1x8x8xbf16>
    %251 = vector.shape_cast %250 : vector<1x8x8xbf16> to vector<8x8xbf16>
    %cst_203 = arith.constant dense<0.000000e+00> : vector<8x256xf32>
    %252 = tpu.matmul %251, %249, %cst_203 {dimension_numbers = #tpu.dot_dimension_numbers<[1], [0], [0], [1], [0, 0, 1, 1], [], []>} : vector<8x8xbf16>, vector<8x256xbf16>, vector<8x256xf32> -> vector<8x256xf32>
    %253 = vector.broadcast %29 : vector<1x256xf32> to vector<8x256xf32>
    %254 = arith.mulf %252, %253 : vector<8x256xf32>
    %255 = arith.addf %248, %254 : vector<8x256xf32>
    %c0_204 = arith.constant 0 : index
    %c128_205 = arith.constant 128 : index
    %256 = vector.load %arg12[%c0_204, %c128_205] : memref<28x512xbf16, #tpu.memory_space<vmem>>, vector<8x256xbf16>
    %c4_206 = arith.constant 4 : index
    %c0_207 = arith.constant 0 : index
    %c0_208 = arith.constant 0 : index
    %257 = vector.load %arg9[%c4_206, %c0_207, %c0_208] : memref<9x8x8xbf16, #tpu.memory_space<vmem>>, vector<1x8x8xbf16>
    %258 = vector.shape_cast %257 : vector<1x8x8xbf16> to vector<8x8xbf16>
    %cst_209 = arith.constant dense<0.000000e+00> : vector<8x256xf32>
    %259 = tpu.matmul %258, %256, %cst_209 {dimension_numbers = #tpu.dot_dimension_numbers<[1], [0], [0], [1], [0, 0, 1, 1], [], []>} : vector<8x8xbf16>, vector<8x256xbf16>, vector<8x256xf32> -> vector<8x256xf32>
    %260 = arith.addf %255, %259 : vector<8x256xf32>
    %c0_210 = arith.constant 0 : index
    %c129_211 = arith.constant 129 : index
    %261 = vector.load %arg12[%c0_210, %c129_211] : memref<28x512xbf16, #tpu.memory_space<vmem>>, vector<8x256xbf16>
    %c5_212 = arith.constant 5 : index
    %c0_213 = arith.constant 0 : index
    %c0_214 = arith.constant 0 : index
    %262 = vector.load %arg9[%c5_212, %c0_213, %c0_214] : memref<9x8x8xbf16, #tpu.memory_space<vmem>>, vector<1x8x8xbf16>
    %263 = vector.shape_cast %262 : vector<1x8x8xbf16> to vector<8x8xbf16>
    %cst_215 = arith.constant dense<0.000000e+00> : vector<8x256xf32>
    %264 = tpu.matmul %263, %261, %cst_215 {dimension_numbers = #tpu.dot_dimension_numbers<[1], [0], [0], [1], [0, 0, 1, 1], [], []>} : vector<8x8xbf16>, vector<8x256xbf16>, vector<8x256xf32> -> vector<8x256xf32>
    %265 = vector.broadcast %33 : vector<1x256xf32> to vector<8x256xf32>
    %266 = arith.mulf %264, %265 : vector<8x256xf32>
    %267 = arith.addf %260, %266 : vector<8x256xf32>
    %c0_216 = arith.constant 0 : index
    %c143_217 = arith.constant 143 : index
    %268 = vector.load %arg12[%c0_216, %c143_217] : memref<28x512xbf16, #tpu.memory_space<vmem>>, vector<8x256xbf16>
    %c6_218 = arith.constant 6 : index
    %c0_219 = arith.constant 0 : index
    %c0_220 = arith.constant 0 : index
    %269 = vector.load %arg9[%c6_218, %c0_219, %c0_220] : memref<9x8x8xbf16, #tpu.memory_space<vmem>>, vector<1x8x8xbf16>
    %270 = vector.shape_cast %269 : vector<1x8x8xbf16> to vector<8x8xbf16>
    %cst_221 = arith.constant dense<0.000000e+00> : vector<8x256xf32>
    %271 = tpu.matmul %270, %268, %cst_221 {dimension_numbers = #tpu.dot_dimension_numbers<[1], [0], [0], [1], [0, 0, 1, 1], [], []>} : vector<8x8xbf16>, vector<8x256xbf16>, vector<8x256xf32> -> vector<8x256xf32>
    %272 = vector.broadcast %29 : vector<1x256xf32> to vector<8x256xf32>
    %273 = arith.mulf %271, %272 : vector<8x256xf32>
    %274 = arith.addf %267, %273 : vector<8x256xf32>
    %c0_222 = arith.constant 0 : index
    %c144_223 = arith.constant 144 : index
    %275 = vector.load %arg12[%c0_222, %c144_223] : memref<28x512xbf16, #tpu.memory_space<vmem>>, vector<8x256xbf16>
    %c7_224 = arith.constant 7 : index
    %c0_225 = arith.constant 0 : index
    %c0_226 = arith.constant 0 : index
    %276 = vector.load %arg9[%c7_224, %c0_225, %c0_226] : memref<9x8x8xbf16, #tpu.memory_space<vmem>>, vector<1x8x8xbf16>
    %277 = vector.shape_cast %276 : vector<1x8x8xbf16> to vector<8x8xbf16>
    %cst_227 = arith.constant dense<0.000000e+00> : vector<8x256xf32>
    %278 = tpu.matmul %277, %275, %cst_227 {dimension_numbers = #tpu.dot_dimension_numbers<[1], [0], [0], [1], [0, 0, 1, 1], [], []>} : vector<8x8xbf16>, vector<8x256xbf16>, vector<8x256xf32> -> vector<8x256xf32>
    %279 = arith.addf %274, %278 : vector<8x256xf32>
    %c0_228 = arith.constant 0 : index
    %c145_229 = arith.constant 145 : index
    %280 = vector.load %arg12[%c0_228, %c145_229] : memref<28x512xbf16, #tpu.memory_space<vmem>>, vector<8x256xbf16>
    %c8_230 = arith.constant 8 : index
    %c0_231 = arith.constant 0 : index
    %c0_232 = arith.constant 0 : index
    %281 = vector.load %arg9[%c8_230, %c0_231, %c0_232] : memref<9x8x8xbf16, #tpu.memory_space<vmem>>, vector<1x8x8xbf16>
    %282 = vector.shape_cast %281 : vector<1x8x8xbf16> to vector<8x8xbf16>
    %cst_233 = arith.constant dense<0.000000e+00> : vector<8x256xf32>
    %283 = tpu.matmul %282, %280, %cst_233 {dimension_numbers = #tpu.dot_dimension_numbers<[1], [0], [0], [1], [0, 0, 1, 1], [], []>} : vector<8x8xbf16>, vector<8x256xbf16>, vector<8x256xf32> -> vector<8x256xf32>
    %284 = vector.broadcast %33 : vector<1x256xf32> to vector<8x256xf32>
    %285 = arith.mulf %283, %284 : vector<8x256xf32>
    %286 = arith.addf %279, %285 : vector<8x256xf32>
    %c0_234 = arith.constant 0 : index
    %c0_235 = arith.constant 0 : index
    %287 = vector.load %arg10[%c0_234, %c0_235] : memref<8x1xf32, #tpu.memory_space<vmem>>, vector<8x1xf32>
    %288 = vector.broadcast %287 : vector<8x1xf32> to vector<8x256xf32>
    %289 = arith.addf %286, %288 : vector<8x256xf32>
    %cst_236 = arith.constant 0.000000e+00 : f32
    %290 = vector.broadcast %cst_236 : f32 to vector<8x256xf32>
    %291 = arith.maximumf %289, %290 : vector<8x256xf32>
    %c0_237 = arith.constant 0 : index
    %c0_238 = arith.constant 0 : index
    %c0_239 = arith.constant 0 : index
    %292 = vector.load %arg11[%c0_237, %c0_238, %c0_239] : memref<1x8x256xf32, #tpu.memory_space<vmem>>, vector<1x8x256xf32>
    %293 = vector.shape_cast %292 : vector<1x8x256xf32> to vector<8x256xf32>
    %294 = vector.shape_cast %291 : vector<8x256xf32> to vector<1x8x256xf32>
    tpu.vector_store %arg11[%c0_237, %c0_238, %c0_239], %294 {strides = array<i32>} : memref<1x8x256xf32, #tpu.memory_space<vmem>>, vector<1x8x256xf32>,
    return
  }
  func.func @transform_0(%arg0: i32) -> (i32, i32, i32) {
    %c0_i32 = arith.constant 0 : i32
    %c0_i32_0 = arith.constant 0 : i32
    %c0_i32_1 = arith.constant 0 : i32
    return %arg0, %c0_i32, %c0_i32_0 : i32, i32, i32
  }
  func.func @transform_1(%arg0: i32) -> (i32, i32, i32) {
    %c0_i32 = arith.constant 0 : i32
    %c0_i32_0 = arith.constant 0 : i32
    %c0_i32_1 = arith.constant 0 : i32
    return %arg0, %c0_i32, %c0_i32_0 : i32, i32, i32
  }
  func.func @transform_2(%arg0: i32) -> (i32, i32, i32) {
    %c0_i32 = arith.constant 0 : i32
    %c0_i32_0 = arith.constant 0 : i32
    %c0_i32_1 = arith.constant 0 : i32
    %c0_i32_2 = arith.constant 0 : i32
    return %c0_i32, %c0_i32_0, %c0_i32_1 : i32, i32, i32
  }
  func.func @transform_3(%arg0: i32) -> (i32, i32) {
    %c0_i32 = arith.constant 0 : i32
    %c0_i32_0 = arith.constant 0 : i32
    %c0_i32_1 = arith.constant 0 : i32
    return %c0_i32, %c0_i32_0 : i32, i32
  }
  func.func @transform_4(%arg0: i32) -> (i32, i32, i32) {
    %c0_i32 = arith.constant 0 : i32
    %c0_i32_0 = arith.constant 0 : i32
    %c0_i32_1 = arith.constant 0 : i32
    %c0_i32_2 = arith.constant 0 : i32
    return %c0_i32, %c0_i32_0, %c0_i32_1 : i32, i32, i32
  }
  func.func @transform_5(%arg0: i32) -> (i32, i32) {
    %c0_i32 = arith.constant 0 : i32
    %c0_i32_0 = arith.constant 0 : i32
    %c0_i32_1 = arith.constant 0 : i32
    return %c0_i32, %c0_i32_0 : i32, i32
  }
  func.func @transform_6(%arg0: i32) -> (i32, i32, i32) {
    %c0_i32 = arith.constant 0 : i32
    %c0_i32_0 = arith.constant 0 : i32
    %c0_i32_1 = arith.constant 0 : i32
    %c0_i32_2 = arith.constant 0 : i32
    return %c0_i32, %c0_i32_0, %c0_i32_1 : i32, i32, i32
  }
  func.func @transform_7(%arg0: i32) -> (i32, i32) {
    %c0_i32 = arith.constant 0 : i32
    %c0_i32_0 = arith.constant 0 : i32
    %c0_i32_1 = arith.constant 0 : i32
    return %c0_i32, %c0_i32_0 : i32, i32
  }
  func.func @transform_8(%arg0: i32) -> (i32, i32, i32) {
    %c0_i32 = arith.constant 0 : i32
    %c0_i32_0 = arith.constant 0 : i32
    %c0_i32_1 = arith.constant 0 : i32
    %c0_i32_2 = arith.constant 0 : i32
    return %c0_i32, %c0_i32_0, %c0_i32_1 : i32, i32, i32
  }
  func.func @transform_9(%arg0: i32) -> (i32, i32) {
    %c0_i32 = arith.constant 0 : i32
    %c0_i32_0 = arith.constant 0 : i32
    %c0_i32_1 = arith.constant 0 : i32
    return %c0_i32, %c0_i32_0 : i32, i32
  }
  func.func @transform_10(%arg0: i32) -> (i32, i32, i32) {
    %c0_i32 = arith.constant 0 : i32
    %c0_i32_0 = arith.constant 0 : i32
    %c0_i32_1 = arith.constant 0 : i32
    return %arg0, %c0_i32, %c0_i32_0 : i32, i32, i32
  }
}

</mosaic_0001>

<bundles_post_ra>
// kernel: upsampling_block_forward.1
= control target key start
LH: loop header
LB: loop body
LE: loop exit
PB: predicated region body
PF: predicated region fallthrough
CT: control target
= control target key end

     0   :  { %s2812_s13 = smov 0   ;;  %s3357_s0 = inlined_call_operand.vmem [shape: bf16[2,8,256], index: 0, kind: input, shape index: {}]   ;;  %s3358_s1 = inlined_call_operand.vmem [shape: bf16[2,20,256], index: 1, kind: input, shape index: {}]   ;;  %s3359_s2 = inlined_call_operand.vmem [shape: bf16[9,8,28], index: 2, kind: input, shape index: {}]   ;;  %s3360_s3 = inlined_call_operand.vmem [shape: f32[8,1], index: 3, kind: input, shape index: {}]   ;;  %s3361_s4 = inlined_call_operand.vmem [shape: bf16[9,8,8], index: 4, kind: input, shape index: {}]   ;;  %s3362_s5 = inlined_call_operand.vmem [shape: f32[8,1], index: 5, kind: input, shape index: {}]   ;;  %s3363_s6 = inlined_call_operand.vmem [shape: bf16[9,8,8], index: 6, kind: input, shape index: {}]   ;;  %s3364_s7 = inlined_call_operand.vmem [shape: f32[8,1], index: 7, kind: input, shape index: {}]   ;;  %s3365_s8 = inlined_call_operand.vmem [shape: bf16[9,8,8], index: 8, kind: input, shape index: {}]   ;;  %s3366_s9 = inlined_call_operand.vmem [shape: f32[8,1], index: 9, kind: input, shape index: {}]   ;;  %s3367_s10 = inlined_call_operand.vmem [shape: f32[2,8,256], index: 10, kind: output, shape index: {}]  }
   0x1 LB: > { %s2515_s14 = sadd.s32 4294967295, %s2745_s13   ;;  %p2519_p0 = scmp.ge.s32.totalorder %s2745_s13, 1  ;;  %s2745_s13 = sphi %s2812_s13, %s20_s13  }
   0x2   : > { %p322_p1 = scmp.lt.s32.totalorder %s2745_s13, 3 }
   0x4   : > { %p323_p2 = pnand %p2519_p0, %p322_p1 }
   0x5   : > { %p365_p3 = scmp.lt.s32.totalorder (!%p323_p2), %s2515_s14, 1  ;;  %s2748_s23 = smov (!%p323_p2), 17  }
   0x6   : > { %326 = sbr.rel (%p323_p2) target bundleno = 1418 (0x58a), region = 60  ;;  %s2749_s24 = smov (!%p323_p2), 16  }
   0x7   : > { %s2750_s25 = smov (!%p323_p2), 15   ;;  %s2751_s26 = smov (!%p323_p2), 1  }
   0x8   : > { %s2752_s27 = smov (!%p323_p2), 127   ;;  %s2753_s28 = smov (!%p323_p2), 113  }
   0x9   : > { %s2754_s29 = smov (!%p323_p2), 112   ;;  %s2755_s30 = smov (!%p323_p2), 111  }
   0xb   : > { %v2747_v0 = vmov 0   ;;  %s3369_s14 = smov (!%p365_p3, %s2515_s14), 1  ;;  %vm494_vm0 = vcmask 1045504   ;;  %vm483_vm1 = vcmask 138240   ;;  %vm545_vm2 = vcmask 130048  }
   0xc   : > { %383 = vst [vmem:[#allocation2 + $0x20] sm:$0xf] %v2747_v0  ;;  %2736 = vset.pattern.permute.xlu0 %v2747_v0  ;;  %2737 = vset.pattern.permute.xlu2 %v2747_v0  ;;  %s2717_s15 = smul.u32 24, %s3369_s14  ;;  %s2699_s16 = sshll.u32 %s3369_s14, 3  ;;  %v444_v62 = vld [vmem:[%s3359_s2] sm:$0xf] }
   0xd   : > { %384 = vst [vmem:[#allocation2 + $0x30] sm:$0x3] %v2747_v0  ;;  %2738 = vset.pattern.permute.xlu1 %v2747_v0  ;;  %s369_s19 = scalar_lea.vmem %s3357_s0, %s2699_s16  ;;  %vm490_vm3 = vcmask 228352   ;;  %vm603_vm4 = vcmask 121856   ;;  %vm663_vm5 = vcmask 7168   ;;  %vm818_vm6 = vcmask 1039360  }
   0xe   : > { %381 = vst [vmem:[#allocation2] sm:$0xf] %v2747_v0  ;;  %s374_s22 = scalar_lea.vmem %s3358_s1, %s2717_s15  ;;  %v389_v3 = vld [vmem:[%s369_s19] sm:$0xff]  ;;  %vm878_vm7 = vcmask 924672   ;;  %vm938_vm8 = vcmask 916480   ;;  %vm996_vm9 = vcmask 908288  }
   0xf   : > { %382 = vst [vmem:[#allocation2 + $0x10] sm:$0xf] %v2747_v0  ;;  %v392_v2 = vld [vmem:[%s374_s22 + $0x8] sm:$0xff]  ;;  %v393_v5 = vld [vmem:[%s374_s22 + $0x10] sm:$0x33]  ;;  %v391_v6 = vld [vmem:[%s374_s22] sm:$0xff] }
  0x10   : > { %385 = vst [vmem:[#allocation2 + $0xc] sm:$0xf] %v2747_v0  ;;  %vm1077_vm14 = vcmask 1043456   ;;  %vm1073_vm15 = vcmask 64512  }
  0x11   : > { %386 = vst [vmem:[#allocation2 + $0x1c] sm:$0xf] %v2747_v0 }
  0x12   : > { %387 = vst [vmem:[#allocation2 + $0x2c] sm:$0xf] %v2747_v0 }
  0x13   : > { %v2543_v1 = vld [vmem:[#allocation2 + $0x20] sm:$0xf]  ;;  %388 = vst [vmem:[#allocation2 + $0x3c] sm:$0x3] %v2747_v0 }
  0x14   : > { %v2705_v4 = vld [vmem:[#allocation2 + $0x2c] sm:$0x30]  ;;  %395 = vst [vmem:[#allocation2 + $0x24] sm:$0xff] %v392_v2 }
  0x15   : > { %v2544_v7 = vor.u32 %v2705_v4, %v2543_v1  ;;  %v2531_v8 = vld [vmem:[#allocation2] sm:$0xf]  ;;  %396 = vst [vmem:[#allocation2 + $0x34] sm:$0x33] %v393_v5  ;;  %v2555_v4 = vld [vmem:[%s3359_s2 + $0x4] sm:$0xf] }
  0x16   : > { %v2702_v9 = vld [vmem:[#allocation2 + $0xc] sm:$0xf0]  ;;  %390 = vst [vmem:[#allocation2 + $0x4] sm:$0xff] %v389_v3 }
  0x17   : > { %477 = vrot.lane.b32.xlu0 %v2544_v7, %s2748_s23  ;;  %v2532_v10 = vor.u32 %v2702_v9, %v2531_v8  ;;  %394 = vst [vmem:[#allocation2 + $0x14] sm:$0xff] %v391_v6  ;;  %v2594_v38 = vld [vmem:[#allocation2 + $0xc] sm:$0xf] }
  0x18   : > { %v2713_v39 = vld [vmem:[#allocation2 + $0x18] sm:$0xf0] }
  0x19   : > { %471 = vrot.lane.b32.xlu1 %v2532_v10, %s2748_s23  ;;  %v2606_v33 = vld [vmem:[#allocation2 + $0x2c] sm:$0xf]  ;;  %v2595_v40 = vor.u32 %v2713_v39, %v2594_v38 }
  0x1a   : > { %v2716_v34 = vld [vmem:[#allocation2 + $0x38] sm:$0x30] }
  0x1b   : > { %v2551_v11 = vld [vmem:[#allocation2 + $0x28] sm:$0xf]  ;;  %v2704_v17 = vld [vmem:[#allocation2 + $0x24] sm:$0xf]  ;;  %v2607_v37 = vor.u32 %v2716_v34, %v2606_v33 }
  0x1c   : > { %v2706_v12 = vld [vmem:[#allocation2 + $0x34] sm:$0x30]  ;;  %v2545_v18 = vld [vmem:[#allocation2 + $0x30] sm:$0x30]  ;;  %v2598_v23 = vld [vmem:[#allocation2 + $0x24] sm:$0xf] }
  0x1d   : > { %v2552_v13 = vor.u32 %v2706_v12, %v2551_v11  ;;  %v2701_v14 = vld [vmem:[#allocation2 + $0x4] sm:$0xf]  ;;  %v2539_v19 = vld [vmem:[#allocation2 + $0x8] sm:$0xf]  ;;  %v2548_v21 = vor.u32 %v2704_v17, %v2545_v18  ;;  %v2715_v24 = vld [vmem:[#allocation2 + $0x30] sm:$0x30] }
  0x1e   : > { %v2533_v15 = vld [vmem:[#allocation2 + $0x10] sm:$0xf0]  ;;  %v2703_v20 = vld [vmem:[#allocation2 + $0x14] sm:$0xf0]  ;;  %v2714_v25 = vld [vmem:[#allocation2 + $0x28] sm:$0xf]  ;;  %v2599_v27 = vor.u32 %v2715_v24, %v2598_v23 }
  0x1f   : > { %539 = vrot.lane.b32.xlu0 %v2544_v7, %s2749_s24  ;;  %v2536_v16 = vor.u32 %v2701_v14, %v2533_v15  ;;  %v2540_v22 = vor.u32 %v2703_v20, %v2539_v19  ;;  %v2600_v26 = vld [vmem:[#allocation2 + $0x34] sm:$0x30]  ;;  %v2586_v29 = vld [vmem:[#allocation2 + $0x4] sm:$0xf]  ;;  %v2712_v30 = vld [vmem:[#allocation2 + $0x10] sm:$0xf0] }
  0x20   : > { %v2603_v28 = vor.u32 %v2714_v25, %v2600_v26  ;;  %v2711_v31 = vld [vmem:[#allocation2 + $0x8] sm:$0xf]  ;;  %v2588_v32 = vld [vmem:[#allocation2 + $0x14] sm:$0xf0]  ;;  %v2587_v35 = vor.u32 %v2712_v30, %v2586_v29  ;;  %v2575_v6 = vld [vmem:[#allocation2 + $0x24] sm:$0xf] }
  0x21   : > { %481 = vrot.lane.b32.xlu1 %v2552_v13, %s2748_s23  ;;  %473 = vrot.lane.b32.xlu2 %v2536_v16, %s2748_s23  ;;  %v2591_v36 = vor.u32 %v2711_v31, %v2588_v32  ;;  %v2710_v9 = vld [vmem:[#allocation2 + $0x30] sm:$0x30]  ;;  %v2577_v11 = vld [vmem:[#allocation2 + $0x34] sm:$0x30]  ;;  %v2707_v25 = vld [vmem:[#allocation2 + $0x8] sm:$0xf] }
  0x22   : > { %v2708_v24 = vld [vmem:[#allocation2 + $0x10] sm:$0xf0]  ;;  %v2569_v26 = vld [vmem:[#allocation2 + $0x14] sm:$0xf0]  ;;  %v2558_v29 = vld [vmem:[%s3359_s2 + $0x8] sm:$0xf] }
  0x23   : > { %v2572_v31 = vor.u32 %v2707_v25, %v2569_v26 }
  0x27   : > { %479 = vrot.lane.b32.xlu0 %v2548_v21, %s2748_s23 }
  0x29   : > { %541 = vrot.lane.b32.xlu1 %v2548_v21, %s2749_s24  ;;  %475 = vrot.lane.b32.xlu2 %v2540_v22, %s2748_s23 }
  0x2f   : > { %533 = vrot.lane.b32.xlu0 %v2532_v10, %s2749_s24 }
  0x31   : > { %535 = vrot.lane.b32.xlu1 %v2536_v16, %s2749_s24  ;;  %543 = vrot.lane.b32.xlu2 %v2552_v13, %s2749_s24 }
  0x37   : > { %597 = vrot.lane.b32.xlu0 %v2544_v7, %s2750_s25 }
  0x39   : > { %599 = vrot.lane.b32.xlu1 %v2548_v21, %s2750_s25  ;;  %537 = vrot.lane.b32.xlu2 %v2540_v22, %s2749_s24 }
  0x3f   : > { %591 = vrot.lane.b32.xlu0 %v2532_v10, %s2750_s25 }
  0x41   : > { %593 = vrot.lane.b32.xlu1 %v2536_v16, %s2750_s25  ;;  %601 = vrot.lane.b32.xlu2 %v2552_v13, %s2750_s25 }
  0x47   : > { %657 = vrot.lane.b32.xlu0 %v2544_v7, %s2751_s26 }
  0x49   : > { %659 = vrot.lane.b32.xlu1 %v2548_v21, %s2751_s26  ;;  %595 = vrot.lane.b32.xlu2 %v2540_v22, %s2750_s25  ;;  %v2567_v21 = vld [vmem:[#allocation2 + $0x4] sm:$0xf] }
  0x4a   : > { %v2568_v30 = vor.u32 %v2708_v24, %v2567_v21 }
  0x4f   : > { %651 = vrot.lane.b32.xlu0 %v2532_v10, %s2751_s26  ;;  %v2709_v10 = vld [vmem:[#allocation2 + $0x28] sm:$0xf] }
  0x50   : > { %v2580_v17 = vor.u32 %v2709_v10, %v2577_v11 }
  0x51   : > { %653 = vrot.lane.b32.xlu1 %v2536_v16, %s2751_s26  ;;  %661 = vrot.lane.b32.xlu2 %v2552_v13, %s2751_s26  ;;  %v2576_v16 = vor.u32 %v2710_v9, %v2575_v6  ;;  %v2610_v6 = vld [vmem:[%s3359_s2 + $0x18] sm:$0xf] }
  0x52   : > { %v740_v20 = vsel %vm494_vm0, %v2580_v17, 0 }
  0x53   : > { %v737_v19 = vsel %vm494_vm0, %v2576_v16, 0 }
  0x57   : > { %812 = vrot.lane.b32.xlu0 %v2599_v27, %s2752_s27 }
  0x59   : > { %814 = vrot.lane.b32.xlu1 %v2603_v28, %s2752_s27  ;;  %655 = vrot.lane.b32.xlu2 %v2540_v22, %s2751_s26 }
  0x5f   : > { %806 = vrot.lane.b32.xlu0 %v2587_v35, %s2752_s27 }
  0x61   : > { %808 = vrot.lane.b32.xlu1 %v2591_v36, %s2752_s27  ;;  %816 = vrot.lane.b32.xlu2 %v2607_v37, %s2752_s27 }
  0x67   : > { %872 = vrot.lane.b32.xlu0 %v2599_v27, %s2753_s28 }
  0x69   : > { %874 = vrot.lane.b32.xlu1 %v2603_v28, %s2753_s28  ;;  %810 = vrot.lane.b32.xlu2 %v2595_v40, %s2752_s27 }
  0x6f   : > { %866 = vrot.lane.b32.xlu0 %v2587_v35, %s2753_s28 }
  0x71   : > { %868 = vrot.lane.b32.xlu1 %v2591_v36, %s2753_s28  ;;  %876 = vrot.lane.b32.xlu2 %v2607_v37, %s2753_s28 }
  0x77   : > { %932 = vrot.lane.b32.xlu0 %v2599_v27, %s2754_s29 }
  0x79   : > { %934 = vrot.lane.b32.xlu1 %v2603_v28, %s2754_s29  ;;  %870 = vrot.lane.b32.xlu2 %v2595_v40, %s2753_s28 }
  0x7b   : > { %v474_v41 = vpop.permute.xlu2 %473 }
  0x7f   : > { %926 = vrot.lane.b32.xlu0 %v2587_v35, %s2754_s29 }
  0x81   : > { %928 = vrot.lane.b32.xlu1 %v2591_v36, %s2754_s29  ;;  %936 = vrot.lane.b32.xlu2 %v2607_v37, %s2754_s29 }
  0x83   : > { %v476_v42 = vpop.permute.xlu2 %475 }
  0x84   : > { %v485_v61 = vsel %vm483_vm1, %v474_v41, %v476_v42 }
  0x87   : > { %990 = vrot.lane.b32.xlu0 %v2599_v27, %s2755_s30 }
  0x89   : > { %992 = vrot.lane.b32.xlu1 %v2603_v28, %s2755_s30  ;;  %v478_v43 = vpop.permute.xlu0 %477  ;;  %930 = vrot.lane.b32.xlu2 %v2595_v40, %s2754_s29 }
  0x8b   : > { %v472_v44 = vpop.permute.xlu1 %471  ;;  %v544_v45 = vpop.permute.xlu2 %543 }
  0x8c   : > { %v484_v60 = vsel %vm483_vm1, %v472_v44, %v474_v41 }
  0x8f   : > { %984 = vrot.lane.b32.xlu0 %v2587_v35, %s2755_s30 }
  0x91   : > { %986 = vrot.lane.b32.xlu1 %v2591_v36, %s2755_s30  ;;  %v540_v46 = vpop.permute.xlu0 %539  ;;  %994 = vrot.lane.b32.xlu2 %v2607_v37, %s2755_s30 }
  0x93   : > { %v482_v47 = vpop.permute.xlu1 %481  ;;  %v538_v48 = vpop.permute.xlu2 %537 }
  0x99   : > { %v480_v49 = vpop.permute.xlu0 %479  ;;  %988 = vrot.lane.b32.xlu2 %v2595_v40, %s2755_s30 }
  0x9a   : > { %v486_v50 = vsel %vm483_vm1, %v478_v43, %v480_v49  ;;  %v487_v51 = vsel %vm483_vm1, %v480_v49, %v482_v47  ;;  %v2561_v43 = vld [vmem:[%s3359_s2 + $0xc] sm:$0xf] }
  0x9b   : > { %v542_v52 = vpop.permute.xlu1 %541  ;;  %v496_v53 = vsel %vm494_vm0, %v486_v50, 0  ;;  %v499_v54 = vsel %vm494_vm0, %v487_v51, 0  ;;  %v602_v55 = vpop.permute.xlu2 %601 }
  0x9c   : > { %507 = vmatpush.bf16.msra.mxu0 %v496_v53  ;;  %520 = vmatpush.bf16.msra.mxu1 %v499_v54  ;;  %v548_v56 = vsel %vm545_vm2, %v540_v46, %v542_v52  ;;  %v549_v57 = vsel %vm545_vm2, %v542_v52, %v544_v45  ;;  %v2564_v45 = vld [vmem:[%s3359_s2 + $0x10] sm:$0xf] }
  0x9d   : > { %v556_v58 = vsel %vm494_vm0, %v548_v56, 0  ;;  %v559_v59 = vsel %vm494_vm0, %v549_v57, 0  ;;  %v2583_v57 = vld [vmem:[%s3359_s2 + $0x14] sm:$0xf] }
  0x9e   : > { %567 = vmatpush.bf16.msra.mxu2 %v556_v58  ;;  %580 = vmatpush.bf16.msra.mxu3 %v559_v59 }
  0xa0   : > { %508 = vmatpush.bf16.msra.mxu0 %v484_v60  ;;  %521 = vmatpush.bf16.msra.mxu1 %v485_v61 }
  0xa1   : > { %v534_v63 = vpop.permute.xlu0 %533 }
  0xa3   : > { %v536_v0 = vpop.permute.xlu1 %535  ;;  %2553 = vmatmul.msk.bf16.vlgmr.msra.gmra.mxu0 %vm490_vm3, %v444_v62  ;;  %2554 = vmatmul.msk.bf16.vlgmr.msra.gmra.mxu1 %vm490_vm3, %v444_v62  ;;  %v596_v1 = vpop.permute.xlu2 %595 }
  0xa4   : > { %v546_v2 = vsel %vm545_vm2, %v534_v63, %v536_v0  ;;  %v547_v3 = vsel %vm545_vm2, %v536_v0, %v538_v48 }
  0xa5   : > { %568 = vmatpush.bf16.msra.mxu2 %v546_v2  ;;  %581 = vmatpush.bf16.msra.mxu3 %v547_v3 }
  0xa8   : > { %2556 = vmatmul.msk.bf16.vlgmr.msra.gmra.mxu2 %vm490_vm3, %v2555_v4  ;;  %2557 = vmatmul.msk.bf16.vlgmr.msra.gmra.mxu3 %vm490_vm3, %v2555_v4 }
  0xa9   : > { %v598_v5 = vpop.permute.xlu0 %597 }
  0xab   : > { %v600_v7 = vpop.permute.xlu1 %599  ;;  %v662_v8 = vpop.permute.xlu2 %661 }
  0xac   : > { %v606_v12 = vsel %vm603_vm4, %v598_v5, %v600_v7  ;;  %v607_v13 = vsel %vm603_vm4, %v600_v7, %v602_v55  ;;  %v1042_v7 = vld [vmem:[%s3360_s3] sm:$0xff] }
  0xad   : > { %v614_v14 = vsel %vm494_vm0, %v606_v12, 0  ;;  %v617_v15 = vsel %vm494_vm0, %v607_v13, 0  ;;  %1045 = vperm.xlu0 %2736, %v1042_v7  }
  0xae   : > { %625 = vmatpush.bf16.msrb.mxu0 %v614_v14  ;;  %638 = vmatpush.bf16.msrb.mxu1 %v617_v15 }
  0xb1   : > { %v592_v18 = vpop.permute.xlu0 %591 }
  0xb3   : > { %v594_v22 = vpop.permute.xlu1 %593  ;;  %v656_v23 = vpop.permute.xlu2 %655 }
  0xb4   : > { %v604_v27 = vsel %vm603_vm4, %v592_v18, %v594_v22  ;;  %v605_v28 = vsel %vm603_vm4, %v594_v22, %v596_v1 }
  0xb5   : > { %626 = vmatpush.bf16.msrb.mxu0 %v604_v27  ;;  %639 = vmatpush.bf16.msrb.mxu1 %v605_v28 }
  0xb8   : > { %2559 = vmatmul.msk.bf16.vlgmr.msrb.gmra.mxu0 %vm490_vm3, %v2558_v29  ;;  %2560 = vmatmul.msk.bf16.vlgmr.msrb.gmra.mxu1 %vm490_vm3, %v2558_v29 }
  0xb9   : > { %748 = vmatpush.bf16.msra.mxu0 %v737_v19  ;;  %761 = vmatpush.bf16.msra.mxu1 %v740_v20  ;;  %v658_v32 = vpop.permute.xlu0 %657  ;;  %v2613_v19 = vld [vmem:[%s3359_s2 + $0x1c] sm:$0xf] }
  0xbb   : > { %v660_v33 = vpop.permute.xlu1 %659  ;;  %v817_v34 = vpop.permute.xlu2 %816 }
  0xbc   : > { %v666_v35 = vsel %vm663_vm5, %v658_v32, %v660_v33  ;;  %v667_v36 = vsel %vm663_vm5, %v660_v33, %v662_v8  ;;  %v2616_v32 = vld [vmem:[%s3359_s2 + $0x20] sm:$0xf]  ;;  %v397_v33 = vlaneseq }
  0xbd   : > { %749 = vmatpush.bf16.msra.mxu0 %v2568_v30  ;;  %762 = vmatpush.bf16.msra.mxu1 %v2572_v31  ;;  %v674_v37 = vsel %vm494_vm0, %v666_v35, 0  ;;  %v677_v38 = vsel %vm494_vm0, %v667_v36, 0 }
  0xbe   : > { %685 = vmatpush.bf16.msrb.mxu2 %v674_v37  ;;  %698 = vmatpush.bf16.msrb.mxu3 %v677_v38 }
  0xc1   : > { %v652_v39 = vpop.permute.xlu0 %651 }
  0xc3   : > { %v654_v40 = vpop.permute.xlu1 %653  ;;  %v811_v44 = vpop.permute.xlu2 %810 }
  0xc4   : > { %v664_v41 = vsel %vm663_vm5, %v652_v39, %v654_v40  ;;  %v665_v42 = vsel %vm663_vm5, %v654_v40, %v656_v23  ;;  %v2756_v40 = vmov 0.0  }
  0xc5   : > { %686 = vmatpush.bf16.msrb.mxu2 %v664_v41  ;;  %699 = vmatpush.bf16.msrb.mxu3 %v665_v42 }
  0xc8   : > { %2562 = vmatmul.msk.bf16.vlgmr.msrb.gmra.mxu2 %vm490_vm3, %v2561_v43  ;;  %2563 = vmatmul.msk.bf16.vlgmr.msrb.gmra.mxu3 %vm490_vm3, %v2561_v43 }
  0xc9   : > { %v813_v46 = vpop.permute.xlu0 %812  ;;  %2581 = vmatmul.msk.bf16.vlgmr.msra.gmra.mxu0 %vm490_vm3, %v2564_v45  ;;  %2582 = vmatmul.msk.bf16.vlgmr.msra.gmra.mxu1 %vm490_vm3, %v2564_v45 }
  0xcb   : > { %v815_v47 = vpop.permute.xlu1 %814  ;;  %v877_v52 = vpop.permute.xlu2 %876 }
  0xcc   : > { %v821_v48 = vsel %vm818_vm6, %v813_v46, %v815_v47  ;;  %v822_v49 = vsel %vm818_vm6, %v815_v47, %v817_v34  ;;  %v398_v34 = vand.u32 127, %v397_v33 }
  0xcd   : > { %v829_v50 = vsel %vm494_vm0, %v821_v48, 0  ;;  %v832_v51 = vsel %vm494_vm0, %v822_v49, 0 }
  0xce   : > { %840 = vmatpush.bf16.msra.mxu2 %v829_v50  ;;  %853 = vmatpush.bf16.msra.mxu3 %v832_v51  ;;  %v399_v35 = vadd.s32 128, %v398_v34  ;;  %v404_v36 = vand.u32 15, %v398_v34 }
  0xd0   : > { %v411_v37 = vand.u32 15, %v399_v35  ;;  %vm424_vm10 = vcmp.gt.s32.totalorder %v404_v36, 0  ;;  %vm430_vm12 = vcmp.lt.s32.totalorder %v404_v36, 15 }
  0xd1   : > { %v807_v53 = vpop.permute.xlu0 %806  ;;  %v2976_v41 = vsel %vm424_vm10, 1.0, %v2756_v40  ;;  %v2982_v51 = vsel %vm430_vm12, 1.0, %v2756_v40 }
  0xd2   : > { %vm425_vm11 = vcmp.gt.s32.totalorder %v411_v37, 0  ;;  %vm431_vm13 = vcmp.lt.s32.totalorder %v411_v37, 15 }
  0xd3   : > { %v809_v54 = vpop.permute.xlu1 %808  ;;  %v871_v59 = vpop.permute.xlu2 %870  ;;  %v2978_v42 = vsel %vm425_vm11, 1.0, %v2756_v40 }
  0xd4   : > { %v819_v55 = vsel %vm818_vm6, %v807_v53, %v809_v54  ;;  %v820_v56 = vsel %vm818_vm6, %v809_v54, %v811_v44 }
  0xd5   : > { %841 = vmatpush.bf16.msra.mxu2 %v819_v55  ;;  %854 = vmatpush.bf16.msra.mxu3 %v820_v56 }
  0xd8   : > { %2608 = vmatmul.msk.bf16.vlgmr.msra.gmra.mxu2 %vm490_vm3, %v2583_v57  ;;  %2609 = vmatmul.msk.bf16.vlgmr.msra.gmra.mxu3 %vm490_vm3, %v2583_v57 }
  0xd9   : > { %v873_v58 = vpop.permute.xlu0 %872 }
  0xdb   : > { %v875_v60 = vpop.permute.xlu1 %874  ;;  %v937_v3 = vpop.permute.xlu2 %936 }
  0xdc   : > { %v881_v61 = vsel %vm878_vm7, %v873_v58, %v875_v60  ;;  %v882_v62 = vsel %vm878_vm7, %v875_v60, %v877_v52  ;;  %v2984_v52 = vsel %vm431_vm13, 1.0, %v2756_v40 }
  0xdd   : > { %v889_v63 = vsel %vm494_vm0, %v881_v61, 0  ;;  %v892_v0 = vsel %vm494_vm0, %v882_v62, 0 }
  0xde   : > { %900 = vmatpush.bf16.msrb.mxu0 %v889_v63  ;;  %913 = vmatpush.bf16.msrb.mxu1 %v892_v0 }
  0xe1   : > { %v867_v1 = vpop.permute.xlu0 %866 }
  0xe3   : > { %v869_v2 = vpop.permute.xlu1 %868  ;;  %v931_v14 = vpop.permute.xlu2 %930 }
  0xe4   : > { %v879_v4 = vsel %vm878_vm7, %v867_v1, %v869_v2  ;;  %v880_v5 = vsel %vm878_vm7, %v869_v2, %v871_v59 }
  0xe5   : > { %901 = vmatpush.bf16.msrb.mxu0 %v879_v4  ;;  %914 = vmatpush.bf16.msrb.mxu1 %v880_v5 }
  0xe8   : > { %2611 = vmatmul.msk.bf16.vlgmr.msrb.gmra.mxu0 %vm490_vm3, %v2610_v6  ;;  %2612 = vmatmul.msk.bf16.vlgmr.msrb.gmra.mxu1 %vm490_vm3, %v2610_v6 }
  0xe9   : > { %v933_v8 = vpop.permute.xlu0 %932 }
  0xeb   : > { %v935_v9 = vpop.permute.xlu1 %934  ;;  %v995_v20 = vpop.permute.xlu2 %994 }
  0xec   : > { %v941_v10 = vsel %vm938_vm8, %v933_v8, %v935_v9  ;;  %v942_v11 = vsel %vm938_vm8, %v935_v9, %v937_v3 }
  0xed   : > { %v949_v12 = vsel %vm494_vm0, %v941_v10, 0  ;;  %v952_v13 = vsel %vm494_vm0, %v942_v11, 0 }
  0xee   : > { %960 = vmatpush.bf16.msrb.mxu2 %v949_v12  ;;  %973 = vmatpush.bf16.msrb.mxu3 %v952_v13 }
  0xf1   : > { %v927_v15 = vpop.permute.xlu0 %926 }
  0xf3   : > { %v929_v16 = vpop.permute.xlu1 %928  ;;  %v989_v28 = vpop.permute.xlu2 %988 }
  0xf4   : > { %v939_v17 = vsel %vm938_vm8, %v927_v15, %v929_v16  ;;  %v940_v18 = vsel %vm938_vm8, %v929_v16, %v931_v14 }
  0xf5   : > { %961 = vmatpush.bf16.msrb.mxu2 %v939_v17  ;;  %974 = vmatpush.bf16.msrb.mxu3 %v940_v18 }
  0xf8   : > { %2614 = vmatmul.msk.bf16.vlgmr.msrb.gmra.mxu2 %vm490_vm3, %v2613_v19  ;;  %2615 = vmatmul.msk.bf16.vlgmr.msrb.gmra.mxu3 %vm490_vm3, %v2613_v19 }
  0xf9   : > { %v991_v21 = vpop.permute.xlu0 %990 }
  0xfb   : > { %v993_v22 = vpop.permute.xlu1 %992 }
  0xfc   : > { %v999_v23 = vsel %vm996_vm9, %v991_v21, %v993_v22  ;;  %v1000_v24 = vsel %vm996_vm9, %v993_v22, %v995_v20 }
  0xfd   : > { %v1007_v25 = vsel %vm494_vm0, %v999_v23, 0  ;;  %v1010_v26 = vsel %vm494_vm0, %v1000_v24, 0 }
  0xfe   : > { %1018 = vmatpush.bf16.msra.mxu0 %v1007_v25  ;;  %1031 = vmatpush.bf16.msra.mxu1 %v1010_v26 }
 0x101   : > { %v985_v27 = vpop.permute.xlu0 %984 }
 0x103   : > { %v987_v29 = vpop.permute.xlu1 %986 }
 0x104   : > { %v997_v30 = vsel %vm996_vm9, %v985_v27, %v987_v29  ;;  %v998_v31 = vsel %vm996_vm9, %v987_v29, %v989_v28 }
 0x105   : > { %1019 = vmatpush.bf16.msra.mxu0 %v997_v30  ;;  %1032 = vmatpush.bf16.msra.mxu1 %v998_v31 }
 0x108   : > { %2617 = vmatmul.msk.bf16.vlgmr.msra.gmra.mxu0 %vm490_vm3, %v2616_v32  ;;  %2618 = vmatmul.msk.bf16.vlgmr.msra.gmra.mxu1 %vm490_vm3, %v2616_v32 }
 0x120   : > { %v510_v38 = vpop.f32.mrf.mxu0  ;;  %v523_v39 = vpop.f32.mrf.mxu1 }
 0x121   : > { %v527_v43 = vmul.f32 %v2976_v41, %v510_v38  ;;  %v528_v44 = vmul.f32 %v2978_v42, %v523_v39  ;;  %v1046_v39 = vpop.permute.xlu0 %1045 }
 0x128   : > { %v512_v45 = vpop.f32.mrf.mxu0  ;;  %v525_v46 = vpop.f32.mrf.mxu1 }
 0x12b   : > { %v570_v47 = vpop.f32.mrf.mxu2  ;;  %v583_v48 = vpop.f32.mrf.mxu3 }
 0x12c   : > { %v587_v49 = vadd.f32 %v570_v47, %v527_v43  ;;  %v588_v50 = vadd.f32 %v583_v48, %v528_v44 }
 0x133   : > { %v572_v53 = vpop.f32.mrf.mxu2  ;;  %v585_v54 = vpop.f32.mrf.mxu3 }
 0x135   : > { %v628_v55 = vpop.f32.mrf.mxu0  ;;  %v641_v56 = vpop.f32.mrf.mxu1 }
 0x136   : > { %v645_v57 = vmul.f32 %v2982_v51, %v628_v55  ;;  %v646_v58 = vmul.f32 %v2984_v52, %v641_v56 }
 0x138   : > { %v647_v59 = vadd.f32 %v645_v57, %v587_v49  ;;  %v648_v60 = vadd.f32 %v646_v58, %v588_v50 }
 0x13d   : > { %v630_v61 = vpop.f32.mrf.mxu0  ;;  %v643_v62 = vpop.f32.mrf.mxu1 }
 0x146   : > { %v751_v63 = vpop.f32.mrf.mxu0  ;;  %v764_v0 = vpop.f32.mrf.mxu1 }
 0x14b   : > { %v688_v1 = vpop.f32.mrf.mxu2  ;;  %v701_v2 = vpop.f32.mrf.mxu3 }
 0x14c   : > { %v705_v15 = vmul.f32 %v2976_v41, %v688_v1  ;;  %v706_v16 = vmul.f32 %v2978_v42, %v701_v2 }
 0x14e   : > { %v753_v3 = vpop.f32.mrf.mxu0  ;;  %v766_v4 = vpop.f32.mrf.mxu1  ;;  %v707_v19 = vadd.f32 %v705_v15, %v647_v59  ;;  %v708_v20 = vadd.f32 %v706_v16, %v648_v60 }
 0x150   : > { %v768_v23 = vadd.f32 %v751_v63, %v707_v19  ;;  %v769_v24 = vadd.f32 %v764_v0, %v708_v20 }
 0x153   : > { %v690_v5 = vpop.f32.mrf.mxu2  ;;  %v703_v6 = vpop.f32.mrf.mxu3 }
 0x15b   : > { %v843_v7 = vpop.f32.mrf.mxu2  ;;  %v856_v8 = vpop.f32.mrf.mxu3 }
 0x15c   : > { %v860_v21 = vmul.f32 %v2982_v51, %v843_v7  ;;  %v861_v22 = vmul.f32 %v2984_v52, %v856_v8 }
 0x15e   : > { %v862_v27 = vadd.f32 %v860_v21, %v768_v23  ;;  %v863_v28 = vadd.f32 %v861_v22, %v769_v24  ;;  %v2621_v21 = vld [vmem:[%s3361_s4 + $0x4] sm:$0xf] }
 0x163   : > { %v845_v9 = vpop.f32.mrf.mxu2  ;;  %v858_v10 = vpop.f32.mrf.mxu3 }
 0x165   : > { %v903_v11 = vpop.f32.mrf.mxu0  ;;  %v916_v12 = vpop.f32.mrf.mxu1 }
 0x166   : > { %v920_v25 = vmul.f32 %v2976_v41, %v903_v11  ;;  %v921_v26 = vmul.f32 %v2978_v42, %v916_v12  ;;  %v1056_v12 = vld [vmem:[%s3361_s4] sm:$0xf] }
 0x168   : > { %v922_v31 = vadd.f32 %v920_v25, %v862_v27  ;;  %v923_v32 = vadd.f32 %v921_v26, %v863_v28 }
 0x16d   : > { %v905_v13 = vpop.f32.mrf.mxu0  ;;  %v918_v14 = vpop.f32.mrf.mxu1 }
 0x17b   : > { %v963_v17 = vpop.f32.mrf.mxu2  ;;  %v976_v18 = vpop.f32.mrf.mxu3 }
 0x17c   : > { %v980_v35 = vadd.f32 %v963_v17, %v922_v31  ;;  %v981_v36 = vadd.f32 %v976_v18, %v923_v32 }
 0x183   : > { %v965_v29 = vpop.f32.mrf.mxu2  ;;  %v978_v30 = vpop.f32.mrf.mxu3 }
 0x184   : > { %v2624_v30 = vld [vmem:[%s3361_s4 + $0x8] sm:$0xf] }
 0x185   : > { %v1021_v33 = vpop.f32.mrf.mxu0  ;;  %v1034_v34 = vpop.f32.mrf.mxu1 }
 0x186   : > { %v1038_v37 = vmul.f32 %v2982_v51, %v1021_v33  ;;  %v1039_v38 = vmul.f32 %v2984_v52, %v1034_v34 }
 0x188   : > { %v1040_v40 = vadd.f32 %v1038_v37, %v980_v35  ;;  %v1041_v43 = vadd.f32 %v1039_v38, %v981_v36  ;;  %v2627_v37 = vld [vmem:[%s3361_s4 + $0xc] sm:$0xf] }
 0x18a   : > { %v1048_v44 = vadd.f32 %v1046_v39, %v1040_v40  ;;  %v1049_v45 = vadd.f32 %v1046_v39, %v1041_v43 }
 0x18c   : > { %v1050_v46 = vmax.f32 %v1048_v44, 0.0  ;;  %v1051_v47 = vmax.f32 %v1049_v45, 0.0 }
 0x18d   : > { %v1023_v48 = vpop.f32.mrf.mxu0  ;;  %v1036_v49 = vpop.f32.mrf.mxu1 }
 0x18e   : > { %v1052_v50 = vpack.c.bf16 %v1051_v47, %v1050_v46  ;;  %v2630_v47 = vld [vmem:[%s3361_s4 + $0x10] sm:$0xf] }
 0x190   : > { %1053 = vst [vmem:[#allocation2 + $0x4] sm:$0xff] %v1052_v50  ;;  %v1311_v61 = vunpack.c.h.b16 %v1052_v50  ;;  %v1310_v63 = vunpack.c.l.b16 %v1052_v50 }
 0x192   : > { %v1314_v62 = vpack.c.b16 %v1311_v61, %v1311_v61  ;;  %v1313_v0 = vpack.c.b16 %v1310_v63, %v1310_v63 }
 0x194   : > { %v1271_v13 = vsel %vm1077_vm14, %v1313_v0, 0  ;;  %v1274_v29 = vsel %vm1077_vm14, %v1314_v62, 0 }
 0x197   : > { %v1054_v53 = vld [vmem:[#allocation2] sm:$0xff]  ;;  %v1055_v58 = vld [vmem:[#allocation2 + $0x8] sm:$0xff]  }
 0x198   : > { %v1060_v54 = vunpack.c.h.b16 %v1054_v53  ;;  %v1059_v55 = vunpack.c.l.b16 %v1054_v53  ;;  %v1061_v59 = vunpack.c.l.b16 %v1055_v58  ;;  %v1312_v1 = vunpack.c.h.b16 %v1055_v58  ;;  %v1508_v58 = vld [vmem:[%s3362_s5] sm:$0xff] }
 0x19a   : > { %v1063_v56 = vpack.c.b16 %v1060_v54, %v1060_v54  ;;  %v1062_v57 = vpack.c.b16 %v1059_v55, %v1059_v55  ;;  %v1064_v60 = vpack.c.b16 %v1061_v59, %v1061_v59  ;;  %v1315_v2 = vpack.c.b16 %v1312_v1, %v1312_v1 }
 0x19c   : > { %1165 = vrot.lane.b32.xlu0 %v1063_v56, %s2750_s25  ;;  %1067 = vrot.lane.b32.xlu2 %v1063_v56, %s2748_s23 }
 0x19d   : > { %1065 = vrot.lane.b32.xlu1 %v1062_v57, %s2748_s23 }
 0x1a4   : > { %1118 = vrot.lane.b32.xlu0 %v1063_v56, %s2749_s24  ;;  %1163 = vrot.lane.b32.xlu2 %v1062_v57, %s2750_s25 }
 0x1a5   : > { %1069 = vrot.lane.b32.xlu1 %v1064_v60, %s2748_s23 }
 0x1ac   : > { %1214 = vrot.lane.b32.xlu0 %v1063_v56, %s2751_s26  ;;  %1116 = vrot.lane.b32.xlu2 %v1062_v57, %s2749_s24 }
 0x1ad   : > { %1167 = vrot.lane.b32.xlu1 %v1064_v60, %s2750_s25 }
 0x1b4   : > { %1367 = vrot.lane.b32.xlu0 %v1314_v62, %s2753_s28  ;;  %1212 = vrot.lane.b32.xlu2 %v1062_v57, %s2751_s26  ;;  %v2633_v57 = vld [vmem:[%s3361_s4 + $0x14] sm:$0xf] }
 0x1b5   : > { %1120 = vrot.lane.b32.xlu1 %v1064_v60, %s2749_s24 }
 0x1bc   : > { %1318 = vrot.lane.b32.xlu0 %v1314_v62, %s2752_s27  ;;  %1365 = vrot.lane.b32.xlu2 %v1313_v0, %s2753_s28 }
 0x1bd   : > { %1216 = vrot.lane.b32.xlu1 %v1064_v60, %s2751_s26 }
 0x1c4   : > { %1463 = vrot.lane.b32.xlu0 %v1314_v62, %s2755_s30  ;;  %1316 = vrot.lane.b32.xlu2 %v1313_v0, %s2752_s27 }
 0x1c5   : > { %1369 = vrot.lane.b32.xlu1 %v1315_v2, %s2753_s28 }
 0x1cc   : > { %1416 = vrot.lane.b32.xlu0 %v1314_v62, %s2754_s29  ;;  %1461 = vrot.lane.b32.xlu2 %v1313_v0, %s2755_s30 }
 0x1cd   : > { %1320 = vrot.lane.b32.xlu1 %v1315_v2, %s2752_s27 }
 0x1d4   : > { %1414 = vrot.lane.b32.xlu2 %v1313_v0, %s2754_s29 }
 0x1d5   : > { %1465 = vrot.lane.b32.xlu1 %v1315_v2, %s2755_s30 }
 0x1dc   : > { %1511 = vperm.xlu2 %2737, %v1508_v58  }
 0x1dd   : > { %1418 = vrot.lane.b32.xlu1 %v1315_v2, %s2754_s29  ;;  %v2636_v2 = vld [vmem:[%s3361_s4 + $0x18] sm:$0xf] }
 0x1f6   : > { %v1068_v3 = vpop.permute.xlu2 %1067 }
 0x1fe   : > { %v1164_v4 = vpop.permute.xlu2 %1163 }
 0x206   : > { %v1117_v5 = vpop.permute.xlu2 %1116 }
 0x20e   : > { %v1166_v6 = vpop.permute.xlu0 %1165  ;;  %v1213_v14 = vpop.permute.xlu2 %1212 }
 0x20f   : > { %v1169_v7 = vsel %vm603_vm4, %v1164_v4, %v1166_v6  ;;  %v1066_v8 = vpop.permute.xlu1 %1065 }
 0x210   : > { %v1175_v9 = vsel %vm1077_vm14, %v1169_v7, 0  ;;  %v1071_v10 = vsel %vm483_vm1, %v1066_v8, %v1068_v3 }
 0x211   : > { %v1079_v11 = vsel %vm1077_vm14, %v1071_v10, 0  ;;  %v2642_v10 = vld [vmem:[%s3361_s4 + $0x20] sm:$0xf] }
 0x212   : > { %1091 = vmatpush.bf16.msra.mxu2 %v1079_v11 }
 0x215   : > { %2619 = vmatmul.msk.bf16.vlgmr.msra.gmra.mxu2 %vm1073_vm15, %v1056_v12 }
 0x216   : > { %1187 = vmatpush.bf16.msrb.mxu2 %v1175_v9  ;;  %v1119_v15 = vpop.permute.xlu0 %1118  ;;  %v1366_v25 = vpop.permute.xlu2 %1365 }
 0x217   : > { %v1122_v16 = vsel %vm545_vm2, %v1117_v5, %v1119_v15  ;;  %v1070_v17 = vpop.permute.xlu1 %1069 }
 0x218   : > { %v1128_v18 = vsel %vm1077_vm14, %v1122_v16, 0  ;;  %v1072_v19 = vsel %vm483_vm1, %v1068_v3, %v1070_v17 }
 0x219   : > { %v1082_v20 = vsel %vm1077_vm14, %v1072_v19, 0  ;;  %1140 = vmatpush.bf16.msrb.mxu0 %v1128_v18 }
 0x21a   : > { %1283 = vmatpush.bf16.msra.mxu2 %v1271_v13  ;;  %1104 = vmatpush.bf16.msra.mxu3 %v1082_v20 }
 0x21c   : > { %2622 = vmatmul.msk.bf16.vlgmr.msrb.gmra.mxu0 %vm1073_vm15, %v2621_v21 }
 0x21d   : > { %2620 = vmatmul.msk.bf16.vlgmr.msra.gmra.mxu3 %vm1073_vm15, %v1056_v12 }
 0x21e   : > { %v1215_v22 = vpop.permute.xlu0 %1214  ;;  %v1317_v38 = vpop.permute.xlu2 %1316 }
 0x21f   : > { %v1218_v23 = vsel %vm663_vm5, %v1213_v14, %v1215_v22  ;;  %v1168_v24 = vpop.permute.xlu1 %1167 }
 0x220   : > { %v1224_v26 = vsel %vm1077_vm14, %v1218_v23, 0  ;;  %v1170_v27 = vsel %vm603_vm4, %v1166_v6, %v1168_v24  ;;  %v2639_v6 = vld [vmem:[%s3361_s4 + $0x1c] sm:$0xf] }
 0x221   : > { %v1178_v28 = vsel %vm1077_vm14, %v1170_v27, 0  ;;  %1236 = vmatpush.bf16.msra.mxu0 %v1224_v26 }
 0x222   : > { %1200 = vmatpush.bf16.msrb.mxu3 %v1178_v28 }
 0x225   : > { %2625 = vmatmul.msk.bf16.vlgmr.msrb.gmra.mxu2 %vm1073_vm15, %v2624_v30 }
 0x226   : > { %1296 = vmatpush.bf16.msra.mxu3 %v1274_v29  ;;  %v1368_v31 = vpop.permute.xlu0 %1367  ;;  %v1462_v48 = vpop.permute.xlu2 %1461 }
 0x227   : > { %v1371_v32 = vsel %vm878_vm7, %v1366_v25, %v1368_v31  ;;  %v1121_v33 = vpop.permute.xlu1 %1120 }
 0x228   : > { %v1377_v34 = vsel %vm1077_vm14, %v1371_v32, 0  ;;  %v1123_v35 = vsel %vm545_vm2, %v1119_v15, %v1121_v33 }
 0x229   : > { %v1131_v36 = vsel %vm1077_vm14, %v1123_v35, 0  ;;  %1389 = vmatpush.bf16.msrb.mxu2 %v1377_v34 }
 0x22a   : > { %1153 = vmatpush.bf16.msrb.mxu1 %v1131_v36 }
 0x22c   : > { %2628 = vmatmul.msk.bf16.vlgmr.msra.gmra.mxu0 %vm1073_vm15, %v2627_v37 }
 0x22d   : > { %2623 = vmatmul.msk.bf16.vlgmr.msrb.gmra.mxu1 %vm1073_vm15, %v2621_v21  ;;  %2626 = vmatmul.msk.bf16.vlgmr.msrb.gmra.mxu3 %vm1073_vm15, %v2624_v30 }
 0x22e   : > { %v1319_v39 = vpop.permute.xlu0 %1318  ;;  %v1415_v59 = vpop.permute.xlu2 %1414 }
 0x22f   : > { %v1322_v40 = vsel %vm818_vm6, %v1317_v38, %v1319_v39  ;;  %v1217_v43 = vpop.permute.xlu1 %1216 }
 0x230   : > { %v1328_v44 = vsel %vm1077_vm14, %v1322_v40, 0  ;;  %v1219_v45 = vsel %vm663_vm5, %v1215_v22, %v1217_v43 }
 0x231   : > { %v1227_v46 = vsel %vm1077_vm14, %v1219_v45, 0  ;;  %1340 = vmatpush.bf16.msrb.mxu0 %v1328_v44 }
 0x232   : > { %1249 = vmatpush.bf16.msra.mxu1 %v1227_v46 }
 0x235   : > { %2631 = vmatmul.msk.bf16.vlgmr.msra.gmra.mxu2 %vm1073_vm15, %v2630_v47 }
 0x236   : > { %v1464_v49 = vpop.permute.xlu0 %1463 }
 0x237   : > { %v1467_v50 = vsel %vm996_vm9, %v1462_v48, %v1464_v49  ;;  %v1370_v53 = vpop.permute.xlu1 %1369 }
 0x238   : > { %v1473_v54 = vsel %vm1077_vm14, %v1467_v50, 0  ;;  %v1372_v55 = vsel %vm878_vm7, %v1368_v31, %v1370_v53 }
 0x239   : > { %v1380_v56 = vsel %vm1077_vm14, %v1372_v55, 0  ;;  %1485 = vmatpush.bf16.msra.mxu2 %v1473_v54 }
 0x23a   : > { %1402 = vmatpush.bf16.msrb.mxu3 %v1380_v56 }
 0x23c   : > { %2634 = vmatmul.msk.bf16.vlgmr.msrb.gmra.mxu0 %vm1073_vm15, %v2633_v57 }
 0x23d   : > { %2629 = vmatmul.msk.bf16.vlgmr.msra.gmra.mxu1 %vm1073_vm15, %v2627_v37  ;;  %2632 = vmatmul.msk.bf16.vlgmr.msra.gmra.mxu3 %vm1073_vm15, %v2630_v47 }
 0x23e   : > { %v1417_v60 = vpop.permute.xlu0 %1416 }
 0x23f   : > { %v1420_v61 = vsel %vm938_vm8, %v1415_v59, %v1417_v60  ;;  %v1321_v62 = vpop.permute.xlu1 %1320 }
 0x240   : > { %v1426_v63 = vsel %vm1077_vm14, %v1420_v61, 0  ;;  %v1323_v0 = vsel %vm818_vm6, %v1319_v39, %v1321_v62 }
 0x241   : > { %v1331_v1 = vsel %vm1077_vm14, %v1323_v0, 0  ;;  %1438 = vmatpush.bf16.msra.mxu0 %v1426_v63 }
 0x242   : > { %1353 = vmatpush.bf16.msrb.mxu1 %v1331_v1 }
 0x245   : > { %2637 = vmatmul.msk.bf16.vlgmr.msrb.gmra.mxu2 %vm1073_vm15, %v2636_v2 }
 0x247   : > { %v1466_v3 = vpop.permute.xlu1 %1465 }
 0x248   : > { %v1468_v4 = vsel %vm996_vm9, %v1464_v49, %v1466_v3 }
 0x249   : > { %v1476_v5 = vsel %vm1077_vm14, %v1468_v4, 0 }
 0x24a   : > { %1498 = vmatpush.bf16.msra.mxu3 %v1476_v5 }
 0x24c   : > { %2640 = vmatmul.msk.bf16.vlgmr.msra.gmra.mxu0 %vm1073_vm15, %v2639_v6 }
 0x24d   : > { %2635 = vmatmul.msk.bf16.vlgmr.msrb.gmra.mxu1 %vm1073_vm15, %v2633_v57  ;;  %2638 = vmatmul.msk.bf16.vlgmr.msrb.gmra.mxu3 %vm1073_vm15, %v2636_v2 }
 0x24f   : > { %v1419_v7 = vpop.permute.xlu1 %1418 }
 0x250   : > { %v1421_v8 = vsel %vm938_vm8, %v1417_v60, %v1419_v7 }
 0x251   : > { %v1429_v9 = vsel %vm1077_vm14, %v1421_v8, 0  ;;  %v1512_v8 = vpop.permute.xlu2 %1511 }
 0x252   : > { %1451 = vmatpush.bf16.msra.mxu1 %v1429_v9 }
 0x255   : > { %2643 = vmatmul.msk.bf16.vlgmr.msra.gmra.mxu2 %vm1073_vm15, %v2642_v10 }
 0x25d   : > { %2641 = vmatmul.msk.bf16.vlgmr.msra.gmra.mxu1 %vm1073_vm15, %v2639_v6  ;;  %2644 = vmatmul.msk.bf16.vlgmr.msra.gmra.mxu3 %vm1073_vm15, %v2642_v10 }
 0x298   : > { %v1093_v11 = vpop.f32.mrf.mxu2 }
 0x299   : > { %v1142_v12 = vpop.f32.mrf.mxu0  ;;  %v1110_v34 = vmul.f32 %v2976_v41, %v1093_v11 }
 0x29b   : > { %v1159_v38 = vadd.f32 %v1142_v12, %v1110_v34 }
 0x2a0   : > { %v1095_v13 = vpop.f32.mrf.mxu2  ;;  %v1106_v14 = vpop.f32.mrf.mxu3 }
 0x2a1   : > { %v1144_v15 = vpop.f32.mrf.mxu0  ;;  %v1111_v47 = vmul.f32 %v2978_v42, %v1106_v14 }
 0x2a8   : > { %v1108_v16 = vpop.f32.mrf.mxu3  ;;  %v1189_v17 = vpop.f32.mrf.mxu2 }
 0x2a9   : > { %v1238_v18 = vpop.f32.mrf.mxu0  ;;  %v1206_v37 = vmul.f32 %v2982_v51, %v1189_v17 }
 0x2aa   : > { %v1155_v19 = vpop.f32.mrf.mxu1  ;;  %v1255_v40 = vmul.f32 %v2976_v41, %v1238_v18 }
 0x2ab   : > { %v1208_v39 = vadd.f32 %v1206_v37, %v1159_v38  ;;  %v1160_v53 = vadd.f32 %v1155_v19, %v1111_v47 }
 0x2ad   : > { %v1257_v49 = vadd.f32 %v1255_v40, %v1208_v39 }
 0x2b0   : > { %v1191_v20 = vpop.f32.mrf.mxu2  ;;  %v1202_v21 = vpop.f32.mrf.mxu3 }
 0x2b1   : > { %v1240_v22 = vpop.f32.mrf.mxu0  ;;  %v1207_v48 = vmul.f32 %v2984_v52, %v1202_v21 }
 0x2b2   : > { %v1157_v23 = vpop.f32.mrf.mxu1 }
 0x2b3   : > { %v1209_v57 = vadd.f32 %v1207_v48, %v1160_v53 }
 0x2b8   : > { %v1204_v24 = vpop.f32.mrf.mxu3  ;;  %v1285_v25 = vpop.f32.mrf.mxu2 }
 0x2b9   : > { %v1342_v26 = vpop.f32.mrf.mxu0  ;;  %v1302_v54 = vadd.f32 %v1285_v25, %v1257_v49 }
 0x2ba   : > { %v1251_v27 = vpop.f32.mrf.mxu1  ;;  %v1359_v50 = vmul.f32 %v2982_v51, %v1342_v26 }
 0x2bb   : > { %v1256_v55 = vmul.f32 %v2978_v42, %v1251_v27 }
 0x2bc   : > { %v1361_v58 = vadd.f32 %v1359_v50, %v1302_v54 }
 0x2bd   : > { %v1258_v61 = vadd.f32 %v1256_v55, %v1209_v57 }
 0x2c0   : > { %v1287_v28 = vpop.f32.mrf.mxu2  ;;  %v1298_v29 = vpop.f32.mrf.mxu3 }
 0x2c1   : > { %v1344_v30 = vpop.f32.mrf.mxu0  ;;  %v1303_v1 = vadd.f32 %v1298_v29, %v1258_v61 }
 0x2c2   : > { %v1253_v31 = vpop.f32.mrf.mxu1 }
 0x2c8   : > { %v1300_v32 = vpop.f32.mrf.mxu3  ;;  %v1391_v33 = vpop.f32.mrf.mxu2 }
 0x2c9   : > { %v1440_v35 = vpop.f32.mrf.mxu0  ;;  %v1408_v56 = vmul.f32 %v2976_v41, %v1391_v33 }
 0x2ca   : > { %v1355_v36 = vpop.f32.mrf.mxu1 }
 0x2cb   : > { %v1360_v62 = vmul.f32 %v2984_v52, %v1355_v36  ;;  %v1410_v63 = vadd.f32 %v1408_v56, %v1361_v58  ;;  %v2647_v56 = vld [vmem:[%s3363_s6 + $0x4] sm:$0xf] }
 0x2cd   : > { %v1362_v4 = vadd.f32 %v1360_v62, %v1303_v1  ;;  %v1457_v5 = vadd.f32 %v1440_v35, %v1410_v63  ;;  %v1972_v35 = vld [vmem:[%s3364_s7] sm:$0xff]  ;;  %v2650_v1 = vld [vmem:[%s3363_s6 + $0x8] sm:$0xf] }
 0x2d0   : > { %v1393_v43 = vpop.f32.mrf.mxu2  ;;  %v1404_v44 = vpop.f32.mrf.mxu3 }
 0x2d1   : > { %v1442_v45 = vpop.f32.mrf.mxu0  ;;  %v1409_v2 = vmul.f32 %v2978_v42, %v1404_v44 }
 0x2d2   : > { %v1357_v46 = vpop.f32.mrf.mxu1 }
 0x2d3   : > { %v1411_v7 = vadd.f32 %v1409_v2, %v1362_v4  ;;  %v1522_v46 = vld [vmem:[%s3363_s6] sm:$0xf] }
 0x2d8   : > { %v1406_v59 = vpop.f32.mrf.mxu3  ;;  %v1487_v60 = vpop.f32.mrf.mxu2 }
 0x2d9   : > { %v1504_v3 = vmul.f32 %v2982_v51, %v1487_v60 }
 0x2da   : > { %v1453_v0 = vpop.f32.mrf.mxu1 }
 0x2db   : > { %v1506_v6 = vadd.f32 %v1504_v3, %v1457_v5  ;;  %v1458_v11 = vadd.f32 %v1453_v0, %v1411_v7 }
 0x2dd   : > { %v1514_v14 = vadd.f32 %v1512_v8, %v1506_v6 }
 0x2df   : > { %v1516_v17 = vmax.f32 %v1514_v14, 0.0 }
 0x2e0   : > { %v1489_v9 = vpop.f32.mrf.mxu2  ;;  %v1500_v10 = vpop.f32.mrf.mxu3 }
 0x2e1   : > { %v1505_v12 = vmul.f32 %v2984_v52, %v1500_v10  ;;  %v2653_v10 = vld [vmem:[%s3363_s6 + $0xc] sm:$0xf] }
 0x2e2   : > { %v1455_v13 = vpop.f32.mrf.mxu1 }
 0x2e3   : > { %v1507_v15 = vadd.f32 %v1505_v12, %v1458_v11 }
 0x2e5   : > { %v1515_v16 = vadd.f32 %v1512_v8, %v1507_v15 }
 0x2e7   : > { %v1517_v18 = vmax.f32 %v1515_v16, 0.0 }
 0x2e8   : > { %v1502_v19 = vpop.f32.mrf.mxu3 }
 0x2e9   : > { %v1518_v20 = vpack.c.bf16 %v1517_v18, %v1516_v17  ;;  %v2656_v17 = vld [vmem:[%s3363_s6 + $0x10] sm:$0xf] }
 0x2eb   : > { %1519 = vst [vmem:[#allocation2 + $0x4] sm:$0xff] %v1518_v20  ;;  %v1775_v29 = vunpack.c.h.b16 %v1518_v20  ;;  %v1774_v31 = vunpack.c.l.b16 %v1518_v20 }
 0x2ed   : > { %v1778_v32 = vpack.c.b16 %v1775_v29, %v1775_v29  ;;  %v1777_v34 = vpack.c.b16 %v1774_v31, %v1774_v31 }
 0x2ef   : > { %v1738_v0 = vsel %vm1077_vm14, %v1778_v32, 0  ;;  %v1735_v2 = vsel %vm1077_vm14, %v1777_v34, 0 }
 0x2f2   : > { %v1521_v21 = vld [vmem:[#allocation2 + $0x8] sm:$0xff]   ;;  %v1520_v22 = vld [vmem:[#allocation2] sm:$0xff] }
 0x2f3   : > { %v1527_v23 = vunpack.c.l.b16 %v1521_v21  ;;  %v1526_v24 = vunpack.c.h.b16 %v1520_v22  ;;  %v1525_v25 = vunpack.c.l.b16 %v1520_v22  ;;  %v1776_v30 = vunpack.c.h.b16 %v1521_v21 }
 0x2f5   : > { %v1530_v26 = vpack.c.b16 %v1527_v23, %v1527_v23  ;;  %v1529_v27 = vpack.c.b16 %v1526_v24, %v1526_v24  ;;  %v1528_v28 = vpack.c.b16 %v1525_v25, %v1525_v25  ;;  %v1779_v33 = vpack.c.b16 %v1776_v30, %v1776_v30  ;;  %v2659_v25 = vld [vmem:[%s3363_s6 + $0x14] sm:$0xf] }
 0x2f7   : > { %1535 = vrot.lane.b32.xlu2 %v1530_v26, %s2748_s23  ;;  %1533 = vrot.lane.b32.xlu1 %v1529_v27, %s2748_s23 }
 0x2f8   : > { %1531 = vrot.lane.b32.xlu0 %v1528_v28, %s2748_s23 }
 0x2ff   : > { %1584 = vrot.lane.b32.xlu2 %v1530_v26, %s2749_s24  ;;  %1582 = vrot.lane.b32.xlu1 %v1529_v27, %s2749_s24 }
 0x300   : > { %1580 = vrot.lane.b32.xlu0 %v1528_v28, %s2749_s24 }
 0x307   : > { %1631 = vrot.lane.b32.xlu2 %v1530_v26, %s2750_s25  ;;  %1629 = vrot.lane.b32.xlu1 %v1529_v27, %s2750_s25 }
 0x308   : > { %1627 = vrot.lane.b32.xlu0 %v1528_v28, %s2750_s25 }
 0x30f   : > { %1680 = vrot.lane.b32.xlu2 %v1530_v26, %s2751_s26  ;;  %1678 = vrot.lane.b32.xlu1 %v1529_v27, %s2751_s26 }
 0x310   : > { %1676 = vrot.lane.b32.xlu0 %v1528_v28, %s2751_s26 }
 0x317   : > { %1782 = vrot.lane.b32.xlu1 %v1778_v32, %s2752_s27  ;;  %1784 = vrot.lane.b32.xlu2 %v1779_v33, %s2752_s27 }
 0x318   : > { %1780 = vrot.lane.b32.xlu0 %v1777_v34, %s2752_s27 }
 0x31f   : > { %1831 = vrot.lane.b32.xlu1 %v1778_v32, %s2753_s28  ;;  %1833 = vrot.lane.b32.xlu2 %v1779_v33, %s2753_s28 }
 0x320   : > { %1829 = vrot.lane.b32.xlu0 %v1777_v34, %s2753_s28 }
 0x327   : > { %1880 = vrot.lane.b32.xlu1 %v1778_v32, %s2754_s29  ;;  %1882 = vrot.lane.b32.xlu2 %v1779_v33, %s2754_s29 }
 0x328   : > { %1878 = vrot.lane.b32.xlu0 %v1777_v34, %s2754_s29 }
 0x32f   : > { %1927 = vrot.lane.b32.xlu1 %v1778_v32, %s2755_s30  ;;  %1929 = vrot.lane.b32.xlu2 %v1779_v33, %s2755_s30  ;;  %v2662_v33 = vld [vmem:[%s3363_s6 + $0x18] sm:$0xf] }
 0x330   : > { %1925 = vrot.lane.b32.xlu0 %v1777_v34, %s2755_s30 }
 0x338   : > { %1975 = vperm.xlu0 %2736, %v1972_v35  }
 0x351   : > { %v1536_v36 = vpop.permute.xlu2 %1535 }
 0x359   : > { %v1585_v37 = vpop.permute.xlu2 %1584 }
 0x361   : > { %v1632_v47 = vpop.permute.xlu2 %1631 }
 0x369   : > { %v1534_v38 = vpop.permute.xlu1 %1533  ;;  %v1681_v57 = vpop.permute.xlu2 %1680 }
 0x36a   : > { %v1538_v39 = vsel %vm483_vm1, %v1534_v38, %v1536_v36  ;;  %v1532_v40 = vpop.permute.xlu0 %1531 }
 0x36b   : > { %v1546_v43 = vsel %vm1077_vm14, %v1538_v39, 0  ;;  %v1537_v44 = vsel %vm483_vm1, %v1532_v40, %v1534_v38 }
 0x36c   : > { %v1543_v45 = vsel %vm1077_vm14, %v1537_v44, 0  ;;  %1568 = vmatpush.bf16.msrb.mxu1 %v1546_v43  ;;  %v2665_v43 = vld [vmem:[%s3363_s6 + $0x1c] sm:$0xf]  ;;  %v2668_v44 = vld [vmem:[%s3363_s6 + $0x20] sm:$0xf] }
 0x36d   : > { %1555 = vmatpush.bf16.msrb.mxu0 %v1543_v45 }
 0x36f   : > { %2646 = vmatmul.msk.bf16.vlgmr.msrb.gmra.mxu1 %vm1073_vm15, %v1522_v46 }
 0x370   : > { %2645 = vmatmul.msk.bf16.vlgmr.msrb.gmra.mxu0 %vm1073_vm15, %v1522_v46 }
 0x371   : > { %v1583_v48 = vpop.permute.xlu1 %1582  ;;  %v1785_v8 = vpop.permute.xlu2 %1784 }
 0x372   : > { %v1587_v49 = vsel %vm545_vm2, %v1583_v48, %v1585_v37  ;;  %v1581_v50 = vpop.permute.xlu0 %1580 }
 0x373   : > { %v1595_v53 = vsel %vm1077_vm14, %v1587_v49, 0  ;;  %v1586_v54 = vsel %vm545_vm2, %v1581_v50, %v1583_v48 }
 0x374   : > { %v1592_v55 = vsel %vm1077_vm14, %v1586_v54, 0  ;;  %1617 = vmatpush.bf16.msrb.mxu3 %v1595_v53 }
 0x375   : > { %1604 = vmatpush.bf16.msrb.mxu2 %v1592_v55 }
 0x377   : > { %2649 = vmatmul.msk.bf16.vlgmr.msrb.gmra.mxu3 %vm1073_vm15, %v2647_v56 }
 0x378   : > { %2648 = vmatmul.msk.bf16.vlgmr.msrb.gmra.mxu2 %vm1073_vm15, %v2647_v56 }
 0x379   : > { %v1630_v58 = vpop.permute.xlu1 %1629  ;;  %v1834_v18 = vpop.permute.xlu2 %1833 }
 0x37a   : > { %v1634_v59 = vsel %vm603_vm4, %v1630_v58, %v1632_v47  ;;  %v1628_v60 = vpop.permute.xlu0 %1627 }
 0x37b   : > { %v1642_v61 = vsel %vm1077_vm14, %v1634_v59, 0  ;;  %v1633_v62 = vsel %vm603_vm4, %v1628_v60, %v1630_v58 }
 0x37c   : > { %v1639_v63 = vsel %vm1077_vm14, %v1633_v62, 0  ;;  %1664 = vmatpush.bf16.msra.mxu1 %v1642_v61 }
 0x37d   : > { %1651 = vmatpush.bf16.msra.mxu0 %v1639_v63 }
 0x37f   : > { %2652 = vmatmul.msk.bf16.vlgmr.msra.gmra.mxu1 %vm1073_vm15, %v2650_v1 }
 0x380   : > { %1760 = vmatpush.bf16.msrb.mxu1 %v1738_v0  ;;  %2651 = vmatmul.msk.bf16.vlgmr.msra.gmra.mxu0 %vm1073_vm15, %v2650_v1 }
 0x381   : > { %1747 = vmatpush.bf16.msrb.mxu0 %v1735_v2  ;;  %v1679_v3 = vpop.permute.xlu1 %1678  ;;  %v1883_v26 = vpop.permute.xlu2 %1882 }
 0x382   : > { %v1683_v4 = vsel %vm663_vm5, %v1679_v3, %v1681_v57  ;;  %v1677_v5 = vpop.permute.xlu0 %1676 }
 0x383   : > { %v1691_v6 = vsel %vm1077_vm14, %v1683_v4, 0  ;;  %v1682_v7 = vsel %vm663_vm5, %v1677_v5, %v1679_v3 }
 0x384   : > { %v1688_v9 = vsel %vm1077_vm14, %v1682_v7, 0  ;;  %1713 = vmatpush.bf16.msra.mxu3 %v1691_v6 }
 0x385   : > { %1700 = vmatpush.bf16.msra.mxu2 %v1688_v9 }
 0x387   : > { %2655 = vmatmul.msk.bf16.vlgmr.msra.gmra.mxu3 %vm1073_vm15, %v2653_v10 }
 0x388   : > { %2654 = vmatmul.msk.bf16.vlgmr.msra.gmra.mxu2 %vm1073_vm15, %v2653_v10 }
 0x389   : > { %v1783_v11 = vpop.permute.xlu1 %1782  ;;  %v1930_v34 = vpop.permute.xlu2 %1929 }
 0x38a   : > { %v1787_v12 = vsel %vm818_vm6, %v1783_v11, %v1785_v8  ;;  %v1781_v13 = vpop.permute.xlu0 %1780 }
 0x38b   : > { %v1795_v14 = vsel %vm1077_vm14, %v1787_v12, 0  ;;  %v1786_v15 = vsel %vm818_vm6, %v1781_v13, %v1783_v11 }
 0x38c   : > { %v1792_v16 = vsel %vm1077_vm14, %v1786_v15, 0  ;;  %1817 = vmatpush.bf16.msrb.mxu3 %v1795_v14 }
 0x38d   : > { %1804 = vmatpush.bf16.msrb.mxu2 %v1792_v16 }
 0x38f   : > { %2658 = vmatmul.msk.bf16.vlgmr.msrb.gmra.mxu1 %vm1073_vm15, %v2656_v17 }
 0x390   : > { %2657 = vmatmul.msk.bf16.vlgmr.msrb.gmra.mxu0 %vm1073_vm15, %v2656_v17 }
 0x391   : > { %v1832_v19 = vpop.permute.xlu1 %1831 }
 0x392   : > { %v1836_v20 = vsel %vm878_vm7, %v1832_v19, %v1834_v18  ;;  %v1830_v21 = vpop.permute.xlu0 %1829 }
 0x393   : > { %v1844_v22 = vsel %vm1077_vm14, %v1836_v20, 0  ;;  %v1835_v23 = vsel %vm878_vm7, %v1830_v21, %v1832_v19 }
 0x394   : > { %v1841_v24 = vsel %vm1077_vm14, %v1835_v23, 0  ;;  %1866 = vmatpush.bf16.msra.mxu1 %v1844_v22 }
 0x395   : > { %1853 = vmatpush.bf16.msra.mxu0 %v1841_v24 }
 0x397   : > { %2661 = vmatmul.msk.bf16.vlgmr.msrb.gmra.mxu3 %vm1073_vm15, %v2659_v25 }
 0x398   : > { %2660 = vmatmul.msk.bf16.vlgmr.msrb.gmra.mxu2 %vm1073_vm15, %v2659_v25 }
 0x399   : > { %v1881_v27 = vpop.permute.xlu1 %1880 }
 0x39a   : > { %v1885_v28 = vsel %vm938_vm8, %v1881_v27, %v1883_v26  ;;  %v1879_v29 = vpop.permute.xlu0 %1878 }
 0x39b   : > { %v1893_v30 = vsel %vm1077_vm14, %v1885_v28, 0  ;;  %v1884_v31 = vsel %vm938_vm8, %v1879_v29, %v1881_v27 }
 0x39c   : > { %v1890_v32 = vsel %vm1077_vm14, %v1884_v31, 0  ;;  %1915 = vmatpush.bf16.msra.mxu3 %v1893_v30 }
 0x39d   : > { %1902 = vmatpush.bf16.msra.mxu2 %v1890_v32 }
 0x39f   : > { %2664 = vmatmul.msk.bf16.vlgmr.msra.gmra.mxu1 %vm1073_vm15, %v2662_v33 }
 0x3a0   : > { %2663 = vmatmul.msk.bf16.vlgmr.msra.gmra.mxu0 %vm1073_vm15, %v2662_v33 }
 0x3a1   : > { %v1928_v35 = vpop.permute.xlu1 %1927 }
 0x3a2   : > { %v1932_v36 = vsel %vm996_vm9, %v1928_v35, %v1930_v34  ;;  %v1926_v37 = vpop.permute.xlu0 %1925 }
 0x3a3   : > { %v1940_v38 = vsel %vm1077_vm14, %v1932_v36, 0  ;;  %v1931_v39 = vsel %vm996_vm9, %v1926_v37, %v1928_v35 }
 0x3a4   : > { %v1937_v40 = vsel %vm1077_vm14, %v1931_v39, 0  ;;  %1962 = vmatpush.bf16.msrb.mxu1 %v1940_v38 }
 0x3a5   : > { %1949 = vmatpush.bf16.msrb.mxu0 %v1937_v40 }
 0x3a7   : > { %2667 = vmatmul.msk.bf16.vlgmr.msra.gmra.mxu3 %vm1073_vm15, %v2665_v43 }
 0x3a8   : > { %2666 = vmatmul.msk.bf16.vlgmr.msra.gmra.mxu2 %vm1073_vm15, %v2665_v43 }
 0x3af   : > { %2670 = vmatmul.msk.bf16.vlgmr.msrb.gmra.mxu1 %vm1073_vm15, %v2668_v44 }
 0x3b0   : > { %2669 = vmatmul.msk.bf16.vlgmr.msrb.gmra.mxu0 %vm1073_vm15, %v2668_v44  ;;  %v1976_v44 = vpop.permute.xlu0 %1975 }
 0x3ec   : > { %v1570_v45 = vpop.f32.mrf.mxu1 }
 0x3ed   : > { %v1557_v46 = vpop.f32.mrf.mxu0  ;;  %v1575_v4 = vmul.f32 %v2978_v42, %v1570_v45 }
 0x3ee   : > { %v1574_v7 = vmul.f32 %v2976_v41, %v1557_v46 }
 0x3f4   : > { %v1572_v47 = vpop.f32.mrf.mxu1 }
 0x3f5   : > { %v1559_v48 = vpop.f32.mrf.mxu0 }
 0x3fa   : > { %v1619_v49 = vpop.f32.mrf.mxu3 }
 0x3fb   : > { %v1606_v50 = vpop.f32.mrf.mxu2  ;;  %v1624_v10 = vadd.f32 %v1619_v49, %v1575_v4 }
 0x3fc   : > { %v1666_v53 = vpop.f32.mrf.mxu1  ;;  %v1623_v13 = vadd.f32 %v1606_v50, %v1574_v7 }
 0x3fd   : > { %v1653_v54 = vpop.f32.mrf.mxu0  ;;  %v1671_v5 = vmul.f32 %v2984_v52, %v1666_v53 }
 0x3fe   : > { %v1670_v8 = vmul.f32 %v2982_v51, %v1653_v54 }
 0x3ff   : > { %v1673_v15 = vadd.f32 %v1671_v5, %v1624_v10 }
 0x400   : > { %v1672_v16 = vadd.f32 %v1670_v8, %v1623_v13 }
 0x402   : > { %v1621_v55 = vpop.f32.mrf.mxu3 }
 0x403   : > { %v1608_v56 = vpop.f32.mrf.mxu2 }
 0x404   : > { %v1668_v57 = vpop.f32.mrf.mxu1 }
 0x405   : > { %v1655_v58 = vpop.f32.mrf.mxu0 }
 0x40a   : > { %v1715_v59 = vpop.f32.mrf.mxu3 }
 0x40b   : > { %v1702_v60 = vpop.f32.mrf.mxu2  ;;  %v1720_v11 = vmul.f32 %v2978_v42, %v1715_v59 }
 0x40c   : > { %v1762_v61 = vpop.f32.mrf.mxu1  ;;  %v1719_v14 = vmul.f32 %v2976_v41, %v1702_v60 }
 0x40d   : > { %v1749_v62 = vpop.f32.mrf.mxu0  ;;  %v1722_v17 = vadd.f32 %v1720_v11, %v1673_v15  ;;  %v1986_v15 = vld [vmem:[%s3365_s8] sm:$0xf] }
 0x40e   : > { %v1721_v18 = vadd.f32 %v1719_v14, %v1672_v16 }
 0x40f   : > { %v1767_v24 = vadd.f32 %v1762_v61, %v1722_v17 }
 0x410   : > { %v1766_v26 = vadd.f32 %v1749_v62, %v1721_v18 }
 0x412   : > { %v1717_v63 = vpop.f32.mrf.mxu3 }
 0x413   : > { %v1704_v0 = vpop.f32.mrf.mxu2 }
 0x414   : > { %v1764_v1 = vpop.f32.mrf.mxu1 }
 0x415   : > { %v1751_v2 = vpop.f32.mrf.mxu0 }
 0x41a   : > { %v1819_v3 = vpop.f32.mrf.mxu3 }
 0x41b   : > { %v1806_v6 = vpop.f32.mrf.mxu2  ;;  %v1824_v20 = vmul.f32 %v2984_v52, %v1819_v3 }
 0x41c   : > { %v1868_v9 = vpop.f32.mrf.mxu1  ;;  %v1823_v22 = vmul.f32 %v2982_v51, %v1806_v6 }
 0x41d   : > { %v1855_v12 = vpop.f32.mrf.mxu0  ;;  %v1826_v27 = vadd.f32 %v1824_v20, %v1767_v24  ;;  %v1873_v28 = vmul.f32 %v2978_v42, %v1868_v9 }
 0x41e   : > { %v1825_v29 = vadd.f32 %v1823_v22, %v1766_v26  ;;  %v1872_v30 = vmul.f32 %v2976_v41, %v1855_v12 }
 0x41f   : > { %v1875_v33 = vadd.f32 %v1873_v28, %v1826_v27 }
 0x420   : > { %v1874_v34 = vadd.f32 %v1872_v30, %v1825_v29 }
 0x422   : > { %v1821_v19 = vpop.f32.mrf.mxu3 }
 0x423   : > { %v1808_v21 = vpop.f32.mrf.mxu2 }
 0x424   : > { %v1870_v23 = vpop.f32.mrf.mxu1 }
 0x425   : > { %v1857_v25 = vpop.f32.mrf.mxu0 }
 0x42a   : > { %v1917_v31 = vpop.f32.mrf.mxu3 }
 0x42b   : > { %v1904_v32 = vpop.f32.mrf.mxu2  ;;  %v1922_v36 = vadd.f32 %v1917_v31, %v1875_v33  ;;  %v2676_v33 = vld [vmem:[%s3365_s8 + $0x8] sm:$0xf] }
 0x42c   : > { %v1964_v35 = vpop.f32.mrf.mxu1  ;;  %v1921_v39 = vadd.f32 %v1904_v32, %v1874_v34  ;;  %v2673_v32 = vld [vmem:[%s3365_s8 + $0x4] sm:$0xf] }
 0x42d   : > { %v1951_v37 = vpop.f32.mrf.mxu0  ;;  %v1969_v38 = vmul.f32 %v2984_v52, %v1964_v35 }
 0x42e   : > { %v1968_v40 = vmul.f32 %v2982_v51, %v1951_v37 }
 0x42f   : > { %v1971_v43 = vadd.f32 %v1969_v38, %v1922_v36 }
 0x430   : > { %v1970_v45 = vadd.f32 %v1968_v40, %v1921_v39 }
 0x431   : > { %v1979_v46 = vadd.f32 %v1976_v44, %v1971_v43 }
 0x432   : > { %v1978_v47 = vadd.f32 %v1976_v44, %v1970_v45  ;;  %v1919_v48 = vpop.f32.mrf.mxu3 }
 0x433   : > { %v1981_v49 = vmax.f32 %v1979_v46, 0.0  ;;  %v1906_v50 = vpop.f32.mrf.mxu2 }
 0x434   : > { %v1980_v53 = vmax.f32 %v1978_v47, 0.0  ;;  %v1966_v54 = vpop.f32.mrf.mxu1  ;;  %v2682_v50 = vld [vmem:[%s3365_s8 + $0x10] sm:$0xf] }
 0x435   : > { %v1953_v55 = vpop.f32.mrf.mxu0  ;;  %v2436_v54 = vld [vmem:[%s3366_s9] sm:$0xff] }
 0x436   : > { %v1982_v56 = vpack.c.bf16 %v1981_v49, %v1980_v53  ;;  %v2679_v49 = vld [vmem:[%s3365_s8 + $0xc] sm:$0xf] }
 0x438   : > { %1983 = vst [vmem:[#allocation2 + $0x4] sm:$0xff] %v1982_v56  ;;  %v2239_v2 = vunpack.c.h.b16 %v1982_v56  ;;  %v2238_v3 = vunpack.c.l.b16 %v1982_v56 }
 0x43a   : > { %v2242_v5 = vpack.c.b16 %v2239_v2, %v2239_v2  ;;  %v2241_v6 = vpack.c.b16 %v2238_v3, %v2238_v3 }
 0x43c   : > { %v2202_v23 = vsel %vm1077_vm14, %v2242_v5, 0  ;;  %v2199_v24 = vsel %vm1077_vm14, %v2241_v6, 0 }
 0x43f   : > { %v1985_v57 = vld [vmem:[#allocation2 + $0x8] sm:$0xff]   ;;  %v1984_v58 = vld [vmem:[#allocation2] sm:$0xff] }
 0x440   : > { %v1991_v59 = vunpack.c.l.b16 %v1985_v57  ;;  %v1990_v60 = vunpack.c.h.b16 %v1984_v58  ;;  %v1989_v61 = vunpack.c.l.b16 %v1984_v58  ;;  %v2240_v1 = vunpack.c.h.b16 %v1985_v57 }
 0x442   : > { %v1994_v62 = vpack.c.b16 %v1991_v59, %v1991_v59  ;;  %v1993_v63 = vpack.c.b16 %v1990_v60, %v1990_v60  ;;  %v1992_v0 = vpack.c.b16 %v1989_v61, %v1989_v61  ;;  %v2243_v4 = vpack.c.b16 %v2240_v1, %v2240_v1 }
 0x444   : > { %1999 = vrot.lane.b32.xlu0 %v1994_v62, %s2748_s23  ;;  %1997 = vrot.lane.b32.xlu2 %v1993_v63, %s2748_s23 }
 0x445   : > { %1995 = vrot.lane.b32.xlu1 %v1992_v0, %s2748_s23 }
 0x44c   : > { %2095 = vrot.lane.b32.xlu0 %v1994_v62, %s2750_s25  ;;  %2093 = vrot.lane.b32.xlu2 %v1993_v63, %s2750_s25 }
 0x44d   : > { %2091 = vrot.lane.b32.xlu1 %v1992_v0, %s2750_s25  ;;  %s2700_s25 = sshll.u32 %s3369_s14, 4 }
 0x454   : > { %2048 = vrot.lane.b32.xlu0 %v1994_v62, %s2749_s24  ;;  %2046 = vrot.lane.b32.xlu2 %v1993_v63, %s2749_s24 }
 0x455   : > { %2044 = vrot.lane.b32.xlu1 %v1992_v0, %s2749_s24 }
 0x45c   : > { %2144 = vrot.lane.b32.xlu0 %v1994_v62, %s2751_s26  ;;  %2142 = vrot.lane.b32.xlu2 %v1993_v63, %s2751_s26 }
 0x45d   : > { %2140 = vrot.lane.b32.xlu1 %v1992_v0, %s2751_s26 }
 0x464   : > { %2297 = vrot.lane.b32.xlu0 %v2243_v4, %s2753_s28  ;;  %2295 = vrot.lane.b32.xlu2 %v2242_v5, %s2753_s28 }
 0x465   : > { %2293 = vrot.lane.b32.xlu1 %v2241_v6, %s2753_s28  ;;  %s379_s28 = scalar_lea.vmem %s3367_s10, %s2700_s25 }
 0x46c   : > { %2248 = vrot.lane.b32.xlu0 %v2243_v4, %s2752_s27  ;;  %2246 = vrot.lane.b32.xlu2 %v2242_v5, %s2752_s27 }
 0x46d   : > { %2244 = vrot.lane.b32.xlu1 %v2241_v6, %s2752_s27 }
 0x474   : > { %2393 = vrot.lane.b32.xlu0 %v2243_v4, %s2755_s30  ;;  %2391 = vrot.lane.b32.xlu2 %v2242_v5, %s2755_s30 }
 0x475   : > { %2389 = vrot.lane.b32.xlu1 %v2241_v6, %s2755_s30 }
 0x47c   : > { %2346 = vrot.lane.b32.xlu0 %v2243_v4, %s2754_s29  ;;  %2344 = vrot.lane.b32.xlu2 %v2242_v5, %s2754_s29  ;;  %v2685_v4 = vld [vmem:[%s3365_s8 + $0x14] sm:$0xf]  ;;  %v2688_v5 = vld [vmem:[%s3365_s8 + $0x18] sm:$0xf] }
 0x47d   : > { %2342 = vrot.lane.b32.xlu1 %v2241_v6, %s2754_s29 }
 0x485   : > { %2439 = vperm.xlu1 %2738, %v2436_v54  }
 0x49e   : > { %v1998_v7 = vpop.permute.xlu2 %1997 }
 0x4a6   : > { %v2094_v8 = vpop.permute.xlu2 %2093 }
 0x4ae   : > { %v2047_v16 = vpop.permute.xlu2 %2046 }
 0x4b6   : > { %v2000_v9 = vpop.permute.xlu0 %1999  ;;  %v2143_v25 = vpop.permute.xlu2 %2142 }
 0x4b7   : > { %v2002_v10 = vsel %vm483_vm1, %v1998_v7, %v2000_v9  ;;  %v1996_v11 = vpop.permute.xlu1 %1995 }
 0x4b8   : > { %v2010_v12 = vsel %vm1077_vm14, %v2002_v10, 0  ;;  %v2001_v13 = vsel %vm483_vm1, %v1996_v11, %v1998_v7 }
 0x4b9   : > { %v2007_v14 = vsel %vm1077_vm14, %v2001_v13, 0  ;;  %2032 = vmatpush.bf16.msrb.mxu3 %v2010_v12  ;;  %v2691_v13 = vld [vmem:[%s3365_s8 + $0x1c] sm:$0xf] }
 0x4ba   : > { %2019 = vmatpush.bf16.msrb.mxu2 %v2007_v14  ;;  %v2694_v14 = vld [vmem:[%s3365_s8 + $0x20] sm:$0xf] }
 0x4bc   : > { %2672 = vmatmul.msk.bf16.vlgmr.msrb.gmra.mxu3 %vm1073_vm15, %v1986_v15 }
 0x4bd   : > { %2671 = vmatmul.msk.bf16.vlgmr.msrb.gmra.mxu2 %vm1073_vm15, %v1986_v15 }
 0x4be   : > { %v2096_v17 = vpop.permute.xlu0 %2095  ;;  %v2296_v37 = vpop.permute.xlu2 %2295 }
 0x4bf   : > { %v2098_v18 = vsel %vm603_vm4, %v2094_v8, %v2096_v17  ;;  %v2092_v19 = vpop.permute.xlu1 %2091 }
 0x4c0   : > { %v2106_v20 = vsel %vm1077_vm14, %v2098_v18, 0  ;;  %v2097_v21 = vsel %vm603_vm4, %v2092_v19, %v2094_v8 }
 0x4c1   : > { %v2103_v22 = vsel %vm1077_vm14, %v2097_v21, 0  ;;  %2128 = vmatpush.bf16.msra.mxu3 %v2106_v20 }
 0x4c2   : > { %2115 = vmatpush.bf16.msra.mxu2 %v2103_v22 }
 0x4c5   : > { %2224 = vmatpush.bf16.msrb.mxu3 %v2202_v23 }
 0x4c6   : > { %2211 = vmatpush.bf16.msrb.mxu2 %v2199_v24  ;;  %v2049_v26 = vpop.permute.xlu0 %2048  ;;  %v2247_v53 = vpop.permute.xlu2 %2246 }
 0x4c7   : > { %v2051_v27 = vsel %vm545_vm2, %v2047_v16, %v2049_v26  ;;  %v2045_v28 = vpop.permute.xlu1 %2044 }
 0x4c8   : > { %v2059_v29 = vsel %vm1077_vm14, %v2051_v27, 0  ;;  %v2050_v30 = vsel %vm545_vm2, %v2045_v28, %v2047_v16 }
 0x4c9   : > { %v2056_v31 = vsel %vm1077_vm14, %v2050_v30, 0  ;;  %2081 = vmatpush.bf16.msra.mxu1 %v2059_v29 }
 0x4ca   : > { %2068 = vmatpush.bf16.msra.mxu0 %v2056_v31 }
 0x4cc   : > { %2675 = vmatmul.msk.bf16.vlgmr.msra.gmra.mxu1 %vm1073_vm15, %v2673_v32  ;;  %2678 = vmatmul.msk.bf16.vlgmr.msra.gmra.mxu3 %vm1073_vm15, %v2676_v33 }
 0x4cd   : > { %2674 = vmatmul.msk.bf16.vlgmr.msra.gmra.mxu0 %vm1073_vm15, %v2673_v32  ;;  %2677 = vmatmul.msk.bf16.vlgmr.msra.gmra.mxu2 %vm1073_vm15, %v2676_v33 }
 0x4ce   : > { %v2145_v34 = vpop.permute.xlu0 %2144  ;;  %v2392_v61 = vpop.permute.xlu2 %2391 }
 0x4cf   : > { %v2147_v35 = vsel %vm663_vm5, %v2143_v25, %v2145_v34  ;;  %v2141_v36 = vpop.permute.xlu1 %2140 }
 0x4d0   : > { %v2155_v38 = vsel %vm1077_vm14, %v2147_v35, 0  ;;  %v2146_v39 = vsel %vm663_vm5, %v2141_v36, %v2143_v25 }
 0x4d1   : > { %v2152_v40 = vsel %vm1077_vm14, %v2146_v39, 0  ;;  %2177 = vmatpush.bf16.msrb.mxu1 %v2155_v38 }
 0x4d2   : > { %2164 = vmatpush.bf16.msrb.mxu0 %v2152_v40 }
 0x4d6   : > { %v2298_v43 = vpop.permute.xlu0 %2297  ;;  %v2345_v6 = vpop.permute.xlu2 %2344 }
 0x4d7   : > { %v2300_v44 = vsel %vm878_vm7, %v2296_v37, %v2298_v43  ;;  %v2294_v45 = vpop.permute.xlu1 %2293 }
 0x4d8   : > { %v2308_v46 = vsel %vm1077_vm14, %v2300_v44, 0  ;;  %v2299_v47 = vsel %vm878_vm7, %v2294_v45, %v2296_v37 }
 0x4d9   : > { %v2305_v48 = vsel %vm1077_vm14, %v2299_v47, 0  ;;  %2330 = vmatpush.bf16.msra.mxu3 %v2308_v46 }
 0x4da   : > { %2317 = vmatpush.bf16.msra.mxu2 %v2305_v48 }
 0x4dc   : > { %2681 = vmatmul.msk.bf16.vlgmr.msrb.gmra.mxu1 %vm1073_vm15, %v2679_v49  ;;  %2684 = vmatmul.msk.bf16.vlgmr.msrb.gmra.mxu3 %vm1073_vm15, %v2682_v50 }
 0x4dd   : > { %2680 = vmatmul.msk.bf16.vlgmr.msrb.gmra.mxu0 %vm1073_vm15, %v2679_v49  ;;  %2683 = vmatmul.msk.bf16.vlgmr.msrb.gmra.mxu2 %vm1073_vm15, %v2682_v50 }
 0x4de   : > { %v2249_v55 = vpop.permute.xlu0 %2248 }
 0x4df   : > { %v2251_v56 = vsel %vm818_vm6, %v2247_v53, %v2249_v55  ;;  %v2245_v57 = vpop.permute.xlu1 %2244 }
 0x4e0   : > { %v2259_v58 = vsel %vm1077_vm14, %v2251_v56, 0  ;;  %v2250_v59 = vsel %vm818_vm6, %v2245_v57, %v2247_v53 }
 0x4e1   : > { %v2256_v60 = vsel %vm1077_vm14, %v2250_v59, 0  ;;  %2281 = vmatpush.bf16.msra.mxu1 %v2259_v58 }
 0x4e2   : > { %2268 = vmatpush.bf16.msra.mxu0 %v2256_v60 }
 0x4e6   : > { %v2394_v62 = vpop.permute.xlu0 %2393 }
 0x4e7   : > { %v2396_v63 = vsel %vm996_vm9, %v2392_v61, %v2394_v62  ;;  %v2390_v0 = vpop.permute.xlu1 %2389 }
 0x4e8   : > { %v2404_v1 = vsel %vm1077_vm14, %v2396_v63, 0  ;;  %v2395_v2 = vsel %vm996_vm9, %v2390_v0, %v2392_v61 }
 0x4e9   : > { %v2401_v3 = vsel %vm1077_vm14, %v2395_v2, 0  ;;  %2426 = vmatpush.bf16.msrb.mxu3 %v2404_v1 }
 0x4ea   : > { %2413 = vmatpush.bf16.msrb.mxu2 %v2401_v3 }
 0x4ec   : > { %2687 = vmatmul.msk.bf16.vlgmr.msra.gmra.mxu1 %vm1073_vm15, %v2685_v4  ;;  %2690 = vmatmul.msk.bf16.vlgmr.msra.gmra.mxu3 %vm1073_vm15, %v2688_v5 }
 0x4ed   : > { %2686 = vmatmul.msk.bf16.vlgmr.msra.gmra.mxu0 %vm1073_vm15, %v2685_v4  ;;  %2689 = vmatmul.msk.bf16.vlgmr.msra.gmra.mxu2 %vm1073_vm15, %v2688_v5 }
 0x4ee   : > { %v2347_v7 = vpop.permute.xlu0 %2346 }
 0x4ef   : > { %v2349_v8 = vsel %vm938_vm8, %v2345_v6, %v2347_v7  ;;  %v2343_v9 = vpop.permute.xlu1 %2342 }
 0x4f0   : > { %v2357_v10 = vsel %vm1077_vm14, %v2349_v8, 0  ;;  %v2348_v11 = vsel %vm938_vm8, %v2343_v9, %v2345_v6 }
 0x4f1   : > { %v2354_v12 = vsel %vm1077_vm14, %v2348_v11, 0  ;;  %2379 = vmatpush.bf16.msrb.mxu1 %v2357_v10 }
 0x4f2   : > { %2366 = vmatpush.bf16.msrb.mxu0 %v2354_v12 }
 0x4fc   : > { %2693 = vmatmul.msk.bf16.vlgmr.msrb.gmra.mxu1 %vm1073_vm15, %v2691_v13  ;;  %2696 = vmatmul.msk.bf16.vlgmr.msrb.gmra.mxu3 %vm1073_vm15, %v2694_v14 }
 0x4fd   : > { %2692 = vmatmul.msk.bf16.vlgmr.msrb.gmra.mxu0 %vm1073_vm15, %v2691_v13  ;;  %2695 = vmatmul.msk.bf16.vlgmr.msrb.gmra.mxu2 %vm1073_vm15, %v2694_v14  ;;  %v2440_v13 = vpop.permute.xlu1 %2439 }
 0x53f   : > { %v2034_v15 = vpop.f32.mrf.mxu3 }
 0x540   : > { %v2021_v16 = vpop.f32.mrf.mxu2  ;;  %v2039_v40 = vmul.f32 %v2978_v42, %v2034_v15 }
 0x541   : > { %v2038_v45 = vmul.f32 %v2976_v41, %v2021_v16 }
 0x547   : > { %v2036_v17 = vpop.f32.mrf.mxu3 }
 0x548   : > { %v2023_v18 = vpop.f32.mrf.mxu2 }
 0x549   : > { %v2083_v19 = vpop.f32.mrf.mxu1 }
 0x54a   : > { %v2070_v20 = vpop.f32.mrf.mxu0  ;;  %v2088_v47 = vadd.f32 %v2083_v19, %v2039_v40 }
 0x54b   : > { %v2087_v49 = vadd.f32 %v2070_v20, %v2038_v45 }
 0x54f   : > { %v2130_v21 = vpop.f32.mrf.mxu3 }
 0x550   : > { %v2117_v22 = vpop.f32.mrf.mxu2  ;;  %v2135_v43 = vmul.f32 %v2984_v52, %v2130_v21 }
 0x551   : > { %v2085_v23 = vpop.f32.mrf.mxu1  ;;  %v2134_v46 = vmul.f32 %v2982_v51, %v2117_v22 }
 0x552   : > { %v2072_v24 = vpop.f32.mrf.mxu0  ;;  %v2137_v53 = vadd.f32 %v2135_v43, %v2088_v47 }
 0x553   : > { %v2136_v54 = vadd.f32 %v2134_v46, %v2087_v49 }
 0x557   : > { %v2132_v25 = vpop.f32.mrf.mxu3 }
 0x558   : > { %v2119_v26 = vpop.f32.mrf.mxu2 }
 0x559   : > { %v2179_v27 = vpop.f32.mrf.mxu1 }
 0x55a   : > { %v2166_v28 = vpop.f32.mrf.mxu0  ;;  %v2184_v48 = vmul.f32 %v2978_v42, %v2179_v27 }
 0x55b   : > { %v2183_v50 = vmul.f32 %v2976_v41, %v2166_v28 }
 0x55c   : > { %v2186_v56 = vadd.f32 %v2184_v48, %v2137_v53 }
 0x55d   : > { %v2185_v59 = vadd.f32 %v2183_v50, %v2136_v54 }
 0x55f   : > { %v2226_v29 = vpop.f32.mrf.mxu3 }
 0x560   : > { %v2213_v30 = vpop.f32.mrf.mxu2  ;;  %v2231_v62 = vadd.f32 %v2226_v29, %v2186_v56 }
 0x561   : > { %v2181_v31 = vpop.f32.mrf.mxu1  ;;  %v2230_v1 = vadd.f32 %v2213_v30, %v2185_v59 }
 0x562   : > { %v2168_v32 = vpop.f32.mrf.mxu0 }
 0x567   : > { %v2228_v33 = vpop.f32.mrf.mxu3 }
 0x568   : > { %v2215_v34 = vpop.f32.mrf.mxu2 }
 0x569   : > { %v2283_v35 = vpop.f32.mrf.mxu1 }
 0x56a   : > { %v2270_v36 = vpop.f32.mrf.mxu0  ;;  %v2288_v57 = vmul.f32 %v2984_v52, %v2283_v35 }
 0x56b   : > { %v2287_v60 = vmul.f32 %v2982_v51, %v2270_v36 }
 0x56c   : > { %v2290_v3 = vadd.f32 %v2288_v57, %v2231_v62 }
 0x56d   : > { %v2289_v4 = vadd.f32 %v2287_v60, %v2230_v1 }
 0x56f   : > { %v2332_v37 = vpop.f32.mrf.mxu3 }
 0x570   : > { %v2319_v38 = vpop.f32.mrf.mxu2  ;;  %v2337_v63 = vmul.f32 %v2978_v42, %v2332_v37 }
 0x571   : > { %v2285_v39 = vpop.f32.mrf.mxu1  ;;  %v2336_v2 = vmul.f32 %v2976_v41, %v2319_v38 }
 0x572   : > { %v2272_v44 = vpop.f32.mrf.mxu0  ;;  %v2339_v5 = vadd.f32 %v2337_v63, %v2290_v3 }
 0x573   : > { %v2338_v6 = vadd.f32 %v2336_v2, %v2289_v4 }
 0x577   : > { %v2334_v55 = vpop.f32.mrf.mxu3 }
 0x578   : > { %v2321_v58 = vpop.f32.mrf.mxu2 }
 0x579   : > { %v2381_v61 = vpop.f32.mrf.mxu1 }
 0x57a   : > { %v2368_v0 = vpop.f32.mrf.mxu0  ;;  %v2386_v8 = vadd.f32 %v2381_v61, %v2339_v5 }
 0x57b   : > { %v2385_v11 = vadd.f32 %v2368_v0, %v2338_v6 }
 0x57f   : > { %v2428_v7 = vpop.f32.mrf.mxu3 }
 0x580   : > { %v2415_v9 = vpop.f32.mrf.mxu2  ;;  %v2433_v10 = vmul.f32 %v2984_v52, %v2428_v7 }
 0x581   : > { %v2432_v12 = vmul.f32 %v2982_v51, %v2415_v9  ;;  %v2383_v14 = vpop.f32.mrf.mxu1 }
 0x582   : > { %v2435_v42 = vadd.f32 %v2433_v10, %v2386_v8  ;;  %v2370_v15 = vpop.f32.mrf.mxu0 }
 0x583   : > { %v2434_v16 = vadd.f32 %v2432_v12, %v2385_v11 }
 0x584   : > { %v2443_v17 = vadd.f32 %v2440_v13, %v2435_v42 }
 0x585   : > { %v2442_v41 = vadd.f32 %v2440_v13, %v2434_v16 }
 0x586   : > { %v2445_v18 = vmax.f32 %v2443_v17, 0.0 }
 0x587   : > { %v2444_v19 = vmax.f32 %v2442_v41, 0.0  ;;  %v2430_v20 = vpop.f32.mrf.mxu3 }
 0x588   : > { %2447 = vst [vmem:[%s379_s28 + $0x8] sm:$0xff] %v2445_v18  ;;  %v2417_v52 = vpop.f32.mrf.mxu2 }
 0x589   : > { %2446 = vst [vmem:[%s379_s28] sm:$0xff] %v2444_v19 }
 0x58a PF: > { %s20_s13 = sadd.s32 1, %s2745_s13  }
 0x58b   : > { %p17_p4 = scmp.ge.s32.totalorder %s20_s13, 4  }
 0x58d   :  { %19 = sbr.rel (!%p17_p4) target bundleno = 1 (0x1), region = 125 }

</bundles_post_ra>
